<compile_context>
chip_gen: v7x
topology: tpu7x:2x2x1
jax: 0.10.0
libtpu: 0.0.40
codegen_flags: <defaults>
</compile_context>

<pallas_src>
import jax
import jax.numpy as jnp
from jax.experimental import pallas as pl
from jax.experimental.pallas import tpu as pltpu


def _round_up(x, m):
    return ((x + m - 1) // m) * m


def gdc_kernel(x_ref, wf_ref, bias_ref, o_ref):
    # x_ref:    (TB, K)      flattened NCHW activations, K = C*H*W, native dtype
    # wf_ref:   (K, E_pad)   fused depthwise+linear weight, BN folded, matmul dtype
    # bias_ref: (1, E_pad)   folded additive BN terms (f32)
    # o_ref:    (TB, E_pad)  f32
    x = x_ref[...].astype(wf_ref.dtype)            # cast in VMEM -> bf16 MXU path
    z = jnp.dot(x, wf_ref[...], preferred_element_type=jnp.float32)
    o_ref[...] = z + bias_ref[...]


def _tpu_vmem_capacity_bytes():
    try:
        cap = int(pltpu.get_tpu_info().vmem_capacity_bytes)
        return min(max(cap, 32 * 1024 * 1024), 128 * 1024 * 1024)
    except Exception:
        return 64 * 1024 * 1024   # conservative default: v7x per-TensorCore VMEM


def _choose_tb(B, K, E_pad, x_itemsize, w_itemsize, n_weight_buffers, budget):
    """Largest batch tile whose buffers fit the per-generation VMEM budget."""
    # Grid-invariant buffers: fused weight (1 or 2 buffers) + tiny bias.
    fixed = n_weight_buffers * K * E_pad * w_itemsize + 2 * E_pad * 4
    # Per batch row: double-buffered x tile + f32 output tile, plus the in-VMEM
    # casted copy of the x tile when the input dtype differs from matmul dtype.
    cast_extra = K * w_itemsize if x_itemsize != w_itemsize else 0
    per_b = 2 * (K * x_itemsize + E_pad * 4) + cast_extra
    tb = max(budget - fixed, 8 * per_b) // per_b
    tb = max(8, (tb // 8) * 8)
    tb = min(tb, 1024)
    if B <= tb:
        if B >= 16:
            # Keep >= 2 grid steps so v7x can shard the batch over both TCs.
            return max(8, (((B + 1) // 2 + 7) // 8) * 8)
        return B
    return tb


def gdc_forward(x_nchw, params, eps=1e-5, *, tb=None, matmul_dtype=jnp.bfloat16):
    B, C, H, W = x_nchw.shape
    HW = H * W
    K = C * HW
    E = params["lin_weight"].shape[0]
    E_pad = max(_round_up(E, 128), 128)

    # ---- trace-time BatchNorm folding + depthwise/linear fusion (XLA glue) ----
    s2 = params["bn2_gamma"] / jnp.sqrt(params["bn2_var"] + eps)            # (C,)
    b2 = params["bn2_beta"] - params["bn2_mean"] * s2                       # (C,)
    s1 = 1.0 / jnp.sqrt(params["bn1_var"] + eps)                            # (E,)
    b1 = -params["bn1_mean"] * s1                                           # (E,)

    wdw = params["dw_weight"].reshape(C, HW).astype(jnp.float32) * s2[:, None]  # (C, HW)
    wl = params["lin_weight"].T.astype(jnp.float32) * s1[None, :]               # (C, E)

    wf = (wdw[:, :, None] * wl[:, None, :]).reshape(K, E)                   # (K, E)
    bias = b2 @ wl + b1                                                     # (E,)

    # Pad embedding to a multiple of 128 for unmasked lane-dense stores.
    wf_p = jnp.zeros((K, E_pad), jnp.float32).at[:, :E].set(wf).astype(matmul_dtype)
    bias_p = jnp.zeros((1, E_pad), jnp.float32).at[0, :E].set(bias)

    # Free reshape of contiguous NCHW -> (B, K): no transpose pass, no dtype
    # pass (the kernel casts the tile in VMEM).
    # TODO(synk): have the upstream backbone emit bf16 activations so the
    # dominant x HBM read is also halved.
    x_flat = x_nchw.reshape(B, K)
    x_itemsize = jnp.dtype(x_flat.dtype).itemsize
    w_itemsize = jnp.dtype(matmul_dtype).itemsize

    vmem_cap = _tpu_vmem_capacity_bytes()
    budget = int(0.75 * vmem_cap)        # 96 MiB on 128 MiB parts, 48 MiB on v7x
    vmem_limit = int(0.90 * vmem_cap)

    def run(single_buffer_weight):
        n_wbuf = 1 if single_buffer_weight else 2
        tile_b = tb if tb is not None else _choose_tb(
            B, K, E_pad, x_itemsize, w_itemsize, n_wbuf, budget)
        grid = (pl.cdiv(B, tile_b),)

        if single_buffer_weight:
            wf_spec = pl.BlockSpec((K, E_pad), lambda i: (0, 0),
                                   pipeline_mode=pl.Buffered(1))
        else:
            wf_spec = pl.BlockSpec((K, E_pad), lambda i: (0, 0))

        return pl.pallas_call(
            gdc_kernel,
            out_shape=jax.ShapeDtypeStruct((B, E_pad), jnp.float32),
            grid=grid,
            in_specs=[
                pl.BlockSpec((tile_b, K), lambda i: (i, 0)),    # x, tiled over batch
                wf_spec,                                        # fused weight, VMEM-resident
                pl.BlockSpec((1, E_pad), lambda i: (0, 0)),     # bias, VMEM-resident
            ],
            out_specs=pl.BlockSpec((tile_b, E_pad), lambda i: (i, 0)),
            compiler_params=pltpu.CompilerParams(
                dimension_semantics=("parallel",),   # shard batch over v7x's 2 TCs
                vmem_limit_bytes=vmem_limit,
            ),
        )(x_flat, wf_p, bias_p)

    if hasattr(pl, "Buffered"):
        try:
            out = run(True)
        except Exception:
            out = run(False)   # fall back to default double-buffered weight spec
    else:
        out = run(False)

    return out[:, :E]


def init_params(key, in_c, emb):
    ks = jax.random.split(key, 8)
    return {
        "dw_weight": 0.05 * jax.random.normal(ks[0], (in_c, 1, 7, 7), jnp.float32),
        "lin_weight": 0.05 * jax.random.normal(ks[1], (emb, in_c), jnp.float32),
        "bn2_gamma": 1.0 + 0.1 * jax.random.normal(ks[2], (in_c,), jnp.float32),
        "bn2_beta": 0.1 * jax.random.normal(ks[3], (in_c,), jnp.float32),
        "bn2_mean": 0.1 * jax.random.normal(ks[4], (in_c,), jnp.float32),
        "bn2_var": jnp.abs(1.0 + 0.1 * jax.random.normal(ks[5], (in_c,), jnp.float32)),
        "bn1_mean": 0.1 * jax.random.normal(ks[6], (emb,), jnp.float32),
        "bn1_var": jnp.abs(1.0 + 0.1 * jax.random.normal(ks[7], (emb,), jnp.float32)),
    }


def gdc_reference(x_nchw, params, eps=1e-5):
    # Pure-JAX reference of the same eval-mode forward pass (unfused, f32).
    B, C, H, W = x_nchw.shape
    y = jnp.sum(x_nchw.reshape(B, C, H * W)
                * params["dw_weight"].reshape(C, H * W)[None], axis=-1)
    y = (y - params["bn2_mean"]) / jnp.sqrt(params["bn2_var"] + eps)
    y = y * params["bn2_gamma"] + params["bn2_beta"]
    z = y @ params["lin_weight"].T
    z = (z - params["bn1_mean"]) / jnp.sqrt(params["bn1_var"] + eps)
    return z


if __name__ == "__main__":
    B, in_c, emb = 2, 32, 64
    key = jax.random.PRNGKey(0)
    kx, kp = jax.random.split(key)
    x = jax.random.normal(kx, (B, in_c, 7, 7), jnp.float32)
    params = init_params(kp, in_c, emb)

    ref = gdc_reference(x, params)

    # Exactness check with f32 matmul path.
    out_f32 = jax.block_until_ready(gdc_forward(x, params, matmul_dtype=jnp.float32))
    assert out_f32.shape == (B, emb)
    assert jnp.allclose(out_f32, ref, atol=1e-4, rtol=1e-4)

    # Default (bf16 MXU) path: relaxed tolerance against the f32 reference.
    out_bf16 = jax.block_until_ready(gdc_forward(x, params))
    assert out_bf16.shape == (B, emb)
    assert jnp.allclose(out_bf16, ref, atol=3e-2, rtol=3e-2)

    print("KERNEL_OK")
</pallas_src>

<mosaic_0001>
module attributes {stable_mosaic.version = 11 : i64} {
  func.func @gdc_kernel(%arg0: i32, %arg1: memref<2x1568xf32, #tpu.memory_space<vmem>>, %arg2: memref<1568x128xf32, #tpu.memory_space<vmem>>, %arg3: memref<1x128xf32, #tpu.memory_space<vmem>>, %arg4: memref<2x128xf32, #tpu.memory_space<vmem>>) attributes {dimension_semantics = [#tpu.dimension_semantics<parallel>], iteration_bounds = array<i64: 1>, scalar_prefetch = 0 : i64, scratch_operands = 0 : i64, tpu.core_type = #tpu.core_type<tc>, window_params = [{transform_indices = @transform_0, window_bounds = array<i64: 2, 1568>}, {pipeline_mode = #tpu.pipeline_mode<synchronous>, transform_indices = @transform_1, window_bounds = array<i64: 1568, 128>}, {pipeline_mode = #tpu.pipeline_mode<synchronous>, transform_indices = @transform_2, window_bounds = array<i64: 1, 128>}, {transform_indices = @transform_3, window_bounds = array<i64: 2, 128>}]} {
    %c0 = arith.constant 0 : index
    %c0_0 = arith.constant 0 : index
    %0 = vector.load %arg1[%c0, %c0_0] : memref<2x1568xf32, #tpu.memory_space<vmem>>, vector<2x1568xf32>
    %c0_1 = arith.constant 0 : index
    %c0_2 = arith.constant 0 : index
    %1 = vector.load %arg2[%c0_1, %c0_2] : memref<1568x128xf32, #tpu.memory_space<vmem>>, vector<1568x128xf32>
    %cst = arith.constant dense<0.000000e+00> : vector<2x128xf32>
    %2 = tpu.matmul %0, %1, %cst {dimension_numbers = #tpu.dot_dimension_numbers<[1], [0], [0], [1], [0, 0, 1, 1], [], []>} : vector<2x1568xf32>, vector<1568x128xf32>, vector<2x128xf32> -> vector<2x128xf32>
    %c0_3 = arith.constant 0 : index
    %c0_4 = arith.constant 0 : index
    %3 = vector.load %arg3[%c0_3, %c0_4] : memref<1x128xf32, #tpu.memory_space<vmem>>, vector<1x128xf32>
    %4 = vector.broadcast %3 : vector<1x128xf32> to vector<2x128xf32>
    %5 = arith.addf %2, %4 : vector<2x128xf32>
    %c0_5 = arith.constant 0 : index
    %c0_6 = arith.constant 0 : index
    %6 = vector.load %arg4[%c0_5, %c0_6] : memref<2x128xf32, #tpu.memory_space<vmem>>, vector<2x128xf32>
    tpu.vector_store %arg4[%c0_5, %c0_6], %5 {strides = array<i32>} : memref<2x128xf32, #tpu.memory_space<vmem>>, vector<2x128xf32>,
    return
  }
  func.func @transform_0(%arg0: i32) -> (i32, i32) {
    %c0_i32 = arith.constant 0 : i32
    %c0_i32_0 = arith.constant 0 : i32
    return %arg0, %c0_i32 : i32, i32
  }
  func.func @transform_1(%arg0: i32) -> (i32, i32) {
    %c0_i32 = arith.constant 0 : i32
    %c0_i32_0 = arith.constant 0 : i32
    %c0_i32_1 = arith.constant 0 : i32
    return %c0_i32, %c0_i32_0 : i32, i32
  }
  func.func @transform_2(%arg0: i32) -> (i32, i32) {
    %c0_i32 = arith.constant 0 : i32
    %c0_i32_0 = arith.constant 0 : i32
    %c0_i32_1 = arith.constant 0 : i32
    return %c0_i32, %c0_i32_0 : i32, i32
  }
  func.func @transform_3(%arg0: i32) -> (i32, i32) {
    %c0_i32 = arith.constant 0 : i32
    %c0_i32_0 = arith.constant 0 : i32
    return %arg0, %c0_i32 : i32, i32
  }
}

module attributes {stable_mosaic.version = 11 : i64} {
  func.func @gdc_kernel(%arg0: i32, %arg1: memref<2x1568xf32, #tpu.memory_space<vmem>>, %arg2: memref<1568x128xf32, #tpu.memory_space<vmem>>, %arg3: memref<1x128xf32, #tpu.memory_space<vmem>>, %arg4: memref<2x128xf32, #tpu.memory_space<vmem>>) attributes {dimension_semantics = [#tpu.dimension_semantics<parallel>], iteration_bounds = array<i64: 1>, scalar_prefetch = 0 : i64, scratch_operands = 0 : i64, tpu.core_type = #tpu.core_type<tc>, window_params = [{transform_indices = @transform_0, window_bounds = array<i64: 2, 1568>}, {pipeline_mode = #tpu.pipeline_mode<synchronous>, transform_indices = @transform_1, window_bounds = array<i64: 1568, 128>}, {pipeline_mode = #tpu.pipeline_mode<synchronous>, transform_indices = @transform_2, window_bounds = array<i64: 1, 128>}, {transform_indices = @transform_3, window_bounds = array<i64: 2, 128>}]} {
    %c0 = arith.constant 0 : index
    %c0_0 = arith.constant 0 : index
    %0 = vector.load %arg1[%c0, %c0_0] : memref<2x1568xf32, #tpu.memory_space<vmem>>, vector<2x1568xf32>
    %c0_1 = arith.constant 0 : index
    %c0_2 = arith.constant 0 : index
    %1 = vector.load %arg2[%c0_1, %c0_2] : memref<1568x128xf32, #tpu.memory_space<vmem>>, vector<1568x128xf32>
    %cst = arith.constant dense<0.000000e+00> : vector<2x128xf32>
    %2 = tpu.matmul %0, %1, %cst {dimension_numbers = #tpu.dot_dimension_numbers<[1], [0], [0], [1], [0, 0, 1, 1], [], []>} : vector<2x1568xf32>, vector<1568x128xf32>, vector<2x128xf32> -> vector<2x128xf32>
    %c0_3 = arith.constant 0 : index
    %c0_4 = arith.constant 0 : index
    %3 = vector.load %arg3[%c0_3, %c0_4] : memref<1x128xf32, #tpu.memory_space<vmem>>, vector<1x128xf32>
    %4 = vector.broadcast %3 : vector<1x128xf32> to vector<2x128xf32>
    %5 = arith.addf %2, %4 : vector<2x128xf32>
    %c0_5 = arith.constant 0 : index
    %c0_6 = arith.constant 0 : index
    %6 = vector.load %arg4[%c0_5, %c0_6] : memref<2x128xf32, #tpu.memory_space<vmem>>, vector<2x128xf32>
    tpu.vector_store %arg4[%c0_5, %c0_6], %5 {strides = array<i32>} : memref<2x128xf32, #tpu.memory_space<vmem>>, vector<2x128xf32>,
    return
  }
  func.func @transform_0(%arg0: i32) -> (i32, i32) {
    %c0_i32 = arith.constant 0 : i32
    %c0_i32_0 = arith.constant 0 : i32
    return %arg0, %c0_i32 : i32, i32
  }
  func.func @transform_1(%arg0: i32) -> (i32, i32) {
    %c0_i32 = arith.constant 0 : i32
    %c0_i32_0 = arith.constant 0 : i32
    %c0_i32_1 = arith.constant 0 : i32
    return %c0_i32, %c0_i32_0 : i32, i32
  }
  func.func @transform_2(%arg0: i32) -> (i32, i32) {
    %c0_i32 = arith.constant 0 : i32
    %c0_i32_0 = arith.constant 0 : i32
    %c0_i32_1 = arith.constant 0 : i32
    return %c0_i32, %c0_i32_0 : i32, i32
  }
  func.func @transform_3(%arg0: i32) -> (i32, i32) {
    %c0_i32 = arith.constant 0 : i32
    %c0_i32_0 = arith.constant 0 : i32
    return %arg0, %c0_i32 : i32, i32
  }
}

</mosaic_0001>

<bundles_post_ra>
// kernel: tpu_custom_call.1
= control target key start
LH: loop header
LB: loop body
LE: loop exit
PB: predicated region body
PF: predicated region fallthrough
CT: control target
= control target key end

     0   :  { %8 = vsyncpa [#allocation3], 0  ;;  %s1446_s0 = inlined_call_operand.hbm [shape: f32[2,1568], index: 0, kind: input, shape index: {}]   ;;  %s1447_s1 = inlined_call_operand.hbm [shape: f32[1568,128], index: 1, kind: input, shape index: {}]   ;;  %s1448_s2 = inlined_call_operand.vmem [shape: f32[1,128], index: 2, kind: input, shape index: {}]   ;;  %s1449_s3 = inlined_call_operand.hbm [shape: f32[2,128], index: 3, kind: output, shape index: {}]  }
   0x1   :  { %9 = vsyncpa [#allocation6], 0 }
   0x2   :  { %10 = vsyncpa [#allocation4], 0  ;;  %s1343_s12 = smov [#allocation2]   ;;  %s1344_s14 = smov [#allocation5]  }
   0x3   :  { %s17_s13 = sshll.u32 %s1343_s12, 4  ;;  %s26_s15 = sshll.u32 %s1344_s14, 4  ;;  %s18_s13 = int_to_ptr.vmem [resolvable:$true] %s17_s13  ;;  %s1372_s15 = int_to_ptr.vmem [resolvable:$true] %s26_s15 }
   0x4   :  { %s1271_s18 = scalar_lea.hbm %s1446_s0, 416 }
   0x5   :  { %p1272_p0 = scmp.ne.s32.totalorder %s1446_s0, %s1271_s18  ;;  %p1275_p1 = scmp.lt.u32.totalorder %s1271_s18, %s1446_s0 }
   0x7   :  { %p1277_p2 = pnand %p1275_p1, %p1272_p0 }
   0x9   :  { %1280 = shalt.err (!%p1277_p2)
}
   0xa   :  { %s1281_s23 = scalar_lea.vmem %s18_s13, 416  ;;  %p1286_p4 = scmp.lt.s32.totalorder %s18_s13, %s18_s13 }
   0xb   :  { %p1282_p3 = scmp.ne.s32.totalorder %s18_s13, %s1281_s23  ;;  %p1287_p5 = scmp.lt.s32.totalorder %s1281_s23, %s1281_s23 }
   0xd   :  { %p1288_p6 = por %p1287_p5, %p1286_p4 }
   0xf   :  { %p1289_p7 = pnand %p1288_p6, %p1282_p3 }
  0x11   :  { %1292 = shalt.err (!%p1289_p7)
}
  0x12   :  { %20 = dma.hbm_to_vmem [thread:$0]  %s1446_s0, 416, %s18_s13, [#allocation3]  }
  0x13   :  { %s1293_s28 = scalar_lea.hbm %s1447_s1, 25088 }
  0x14   :  { %p1294_p8 = scmp.ne.s32.totalorder %s1447_s1, %s1293_s28  ;;  %p1297_p9 = scmp.lt.u32.totalorder %s1293_s28, %s1447_s1 }
  0x16   :  { %p1299_p10 = pnand %p1297_p9, %p1294_p8 }
  0x18   :  { %1302 = shalt.err (!%p1299_p10)
}
  0x19   :  { %s1303_s6 = scalar_lea.vmem %s1372_s15, 25088  ;;  %p1308_p12 = scmp.lt.s32.totalorder %s1372_s15, %s1372_s15 }
  0x1a   :  { %p1304_p11 = scmp.ne.s32.totalorder %s1372_s15, %s1303_s6  ;;  %p1309_p13 = scmp.lt.s32.totalorder %s1303_s6, %s1303_s6 }
  0x1c   :  { %p1310_p0 = por %p1309_p13, %p1308_p12 }
  0x1e   :  { %p1311_p1 = pnand %p1310_p0, %p1304_p11 }
  0x20   :  { %1314 = shalt.err (!%p1311_p1)
}
  0x21   :  { %s1345_s0 = smov 128   ;;  %s1346_s7 = smov 8  }
  0x22   :  { %32 = dma.hbm_to_vmem [thread:$0]  %s1447_s1, 25088, %s1372_s15, [#allocation6], %s1345_s0, %s1345_s0, %s1346_s7  }
  0x23   :  { %1337 = dma.done.wait [#allocation3], 416  }
  0x24   :  { %1338 = vsyncadd [#allocation3], 4294966880 }
  0x25   :  { %1339 = dma.done.wait [#allocation6], 25088  }
  0x26   :  { %1340 = vsyncadd [#allocation6], 4294942208  ;;  %v61_v0 = vld [vmem:[#allocation5 + $0x80] sm:$0xff]  ;;  %v62_v1 = vld [vmem:[#allocation5 + $0x88] sm:$0xff]  ;;  %v1347_v43 = vmov 1983009808   ;;  %v256_v45 = vlaneseq }
  0x27   :  { %v45_v2 = vld [vmem:[#allocation5] sm:$0xff]  ;;  %v1061_v3 = vpack.c.bf16 %v62_v1, %v61_v0  ;;  %v46_v4 = vld [vmem:[#allocation5 + $0x8] sm:$0xff]  ;;  %v63_v11 = vld [vmem:[#allocation5 + $0x90] sm:$0xff]  ;;  %v254_v44 = vunpack.c.l.s4 %v1347_v43  ;;  %vm1349_vm0 = vmmov 0   ;;  %vm322_vm1 = vcmask 261120  }
  0x28   :  { %v93_v5 = vld [vmem:[#allocation5 + $0x180] sm:$0xff]  ;;  %v94_v6 = vld [vmem:[#allocation5 + $0x188] sm:$0xff]  ;;  %v1063_v7 = vpack.c.bf16 %v46_v4, %v45_v2  ;;  %v64_v13 = vld [vmem:[#allocation5 + $0x98] sm:$0xff]  ;;  %v257_v60 = vshrl.u32 %v256_v45, 7 }
  0x29   :  { %v1093_v8 = vpack.c.bf16 %v94_v6, %v93_v5  ;;  %v77_v9 = vld [vmem:[#allocation5 + $0x100] sm:$0xff]  ;;  %v78_v10 = vld [vmem:[#allocation5 + $0x108] sm:$0xff]  ;;  %1062 = vmatprep.subr.bf16.mxu0 %v1061_v3  ;;  %v47_v14 = vld [vmem:[#allocation5 + $0x10] sm:$0xff]  ;;  %v1065_v16 = vpack.c.bf16 %v64_v13, %v63_v11  ;;  %v255_v59 = vunpack.c.0.s8 %v254_v44 }
  0x2a   :  { %v1095_v12 = vpack.c.bf16 %v78_v10, %v77_v9  ;;  %v48_v15 = vld [vmem:[#allocation5 + $0x18] sm:$0xff]  ;;  %1064 = vmatpush3.bf16.msra.mxu0 %v1063_v7  ;;  %v95_v18 = vld [vmem:[#allocation5 + $0x190] sm:$0xff]  ;;  %v65_v23 = vld [vmem:[#allocation5 + $0xa0] sm:$0xff] }
  0x2b   :  { %1094 = vmatprep.subr.bf16.mxu1 %v1093_v8  ;;  %v1067_v17 = vpack.c.bf16 %v48_v15, %v47_v14  ;;  %v96_v19 = vld [vmem:[#allocation5 + $0x198] sm:$0xff]  ;;  %v79_v20 = vld [vmem:[#allocation5 + $0x110] sm:$0xff]  ;;  %v66_v24 = vld [vmem:[#allocation5 + $0xa8] sm:$0xff]  ;;  %1066 = vmatprep.subr.bf16.mxu0 %v1065_v16  ;;  %v1403_v10 = vsub.s32 %v255_v59, %v257_v60 }
  0x2c   :  { %1096 = vmatpush3.bf16.msra.mxu1 %v1095_v12  ;;  %v1097_v21 = vpack.c.bf16 %v96_v19, %v95_v18  ;;  %v80_v22 = vld [vmem:[#allocation5 + $0x118] sm:$0xff]  ;;  %v1069_v26 = vpack.c.bf16 %v66_v24, %v65_v23  ;;  %v49_v27 = vld [vmem:[#allocation5 + $0x20] sm:$0xff]  ;;  %v50_v28 = vld [vmem:[#allocation5 + $0x28] sm:$0xff] }
  0x2d   :  { %v1099_v25 = vpack.c.bf16 %v80_v22, %v79_v20  ;;  %v97_v29 = vld [vmem:[#allocation5 + $0x1a0] sm:$0xff]  ;;  %v98_v30 = vld [vmem:[#allocation5 + $0x1a8] sm:$0xff]  ;;  %v1071_v33 = vpack.c.bf16 %v50_v28, %v49_v27  ;;  %v67_v35 = vld [vmem:[#allocation5 + $0xb0] sm:$0xff] }
  0x2e   :  { %1098 = vmatprep.subr.bf16.mxu1 %v1097_v21  ;;  %v81_v31 = vld [vmem:[#allocation5 + $0x120] sm:$0xff]  ;;  %v82_v32 = vld [vmem:[#allocation5 + $0x128] sm:$0xff]  ;;  %1068 = vmatpush3.bf16.msra.mxu0 %v1067_v17  ;;  %v1101_v34 = vpack.c.bf16 %v98_v30, %v97_v29  ;;  %v68_v36 = vld [vmem:[#allocation5 + $0xb8] sm:$0xff] }
  0x2f   :  { %v51_v37 = vld [vmem:[#allocation5 + $0x30] sm:$0xff]  ;;  %1070 = vmatprep.subr.bf16.mxu0 %v1069_v26  ;;  %v1103_v38 = vpack.c.bf16 %v82_v32, %v81_v31  ;;  %v1073_v39 = vpack.c.bf16 %v68_v36, %v67_v35  ;;  %v52_v40 = vld [vmem:[#allocation5 + $0x38] sm:$0xff]  ;;  %v69_v49 = vld [vmem:[#allocation5 + $0xc0] sm:$0xff] }
  0x30   :  { %1100 = vmatpush3.bf16.msra.mxu1 %v1099_v25  ;;  %v99_v41 = vld [vmem:[#allocation5 + $0x1b0] sm:$0xff]  ;;  %v100_v42 = vld [vmem:[#allocation5 + $0x1b8] sm:$0xff]  ;;  %v70_v50 = vld [vmem:[#allocation5 + $0xc8] sm:$0xff]  ;;  %v1075_v51 = vpack.c.bf16 %v52_v40, %v51_v37 }
  0x31   :  { %1102 = vmatprep.subr.bf16.mxu1 %v1101_v34  ;;  %v1105_v46 = vpack.c.bf16 %v100_v42, %v99_v41  ;;  %v83_v47 = vld [vmem:[#allocation5 + $0x130] sm:$0xff]  ;;  %v84_v48 = vld [vmem:[#allocation5 + $0x138] sm:$0xff]  ;;  %v101_v52 = vld [vmem:[#allocation5 + $0x1c0] sm:$0xff]  ;;  %v1077_v55 = vpack.c.bf16 %v70_v50, %v69_v49 }
  0x32   :  { %1072 = vmatpush3.bf16.msra.mxu0 %v1071_v33  ;;  %v102_v53 = vld [vmem:[#allocation5 + $0x1c8] sm:$0xff]  ;;  %v1107_v54 = vpack.c.bf16 %v84_v48, %v83_v47  ;;  %v53_v56 = vld [vmem:[#allocation5 + $0x40] sm:$0xff]  ;;  %v71_v63 = vld [vmem:[#allocation5 + $0xd0] sm:$0xff] }
  0x33   :  { %1074 = vmatprep.subr.bf16.mxu0 %v1073_v39  ;;  %v54_v57 = vld [vmem:[#allocation5 + $0x48] sm:$0xff]  ;;  %v85_v58 = vld [vmem:[#allocation5 + $0x140] sm:$0xff]  ;;  %v1109_v61 = vpack.c.bf16 %v102_v53, %v101_v52  ;;  %v72_v0 = vld [vmem:[#allocation5 + $0xd8] sm:$0xff] }
  0x34   :  { %1104 = vmatpush3.bf16.msra.mxu1 %v1103_v38  ;;  %v86_v62 = vld [vmem:[#allocation5 + $0x148] sm:$0xff]  ;;  %v103_v1 = vld [vmem:[#allocation5 + $0x1d0] sm:$0xff]  ;;  %v104_v2 = vld [vmem:[#allocation5 + $0x1d8] sm:$0xff]  ;;  %v1079_v3 = vpack.c.bf16 %v54_v57, %v53_v56  ;;  %v1081_v6 = vpack.c.bf16 %v72_v0, %v71_v63 }
  0x35   :  { %1106 = vmatprep.subr.bf16.mxu1 %v1105_v46  ;;  %v55_v4 = vld [vmem:[#allocation5 + $0x50] sm:$0xff]  ;;  %v1111_v5 = vpack.c.bf16 %v86_v62, %v85_v58  ;;  %v56_v7 = vld [vmem:[#allocation5 + $0x58] sm:$0xff]  ;;  %v1113_v11 = vpack.c.bf16 %v104_v2, %v103_v1  ;;  %v73_v12 = vld [vmem:[#allocation5 + $0xe0] sm:$0xff] }
  0x36   :  { %1076 = vmatpush3.bf16.msra.mxu0 %v1075_v51  ;;  %v87_v8 = vld [vmem:[#allocation5 + $0x150] sm:$0xff]  ;;  %v88_v9 = vld [vmem:[#allocation5 + $0x158] sm:$0xff]  ;;  %v74_v13 = vld [vmem:[#allocation5 + $0xe8] sm:$0xff]  ;;  %v1083_v16 = vpack.c.bf16 %v56_v7, %v55_v4 }
  0x37   :  { %1078 = vmatprep.subr.bf16.mxu0 %v1077_v55  ;;  %v105_v14 = vld [vmem:[#allocation5 + $0x1e0] sm:$0xff]  ;;  %v106_v15 = vld [vmem:[#allocation5 + $0x1e8] sm:$0xff]  ;;  %v1115_v17 = vpack.c.bf16 %v88_v9, %v87_v8  ;;  %v1085_v19 = vpack.c.bf16 %v74_v13, %v73_v12  ;;  %v75_v27 = vld [vmem:[#allocation5 + $0xf0] sm:$0xff] }
  0x38   :  { %1108 = vmatpush3.bf16.msra.mxu1 %v1107_v54  ;;  %v41_v18 = vld [vmem:[#allocation2] sm:$0xff]  ;;  %v1117_v25 = vpack.c.bf16 %v106_v15, %v105_v14  ;;  %v76_v28 = vld [vmem:[#allocation5 + $0xf8] sm:$0xff]  ;;  %v107_v29 = vld [vmem:[#allocation5 + $0x1f0] sm:$0xff] }
  0x39   :  { %1110 = vmatprep.subr.bf16.mxu1 %v1109_v61  ;;  %v57_v20 = vld [vmem:[#allocation5 + $0x60] sm:$0xff]  ;;  %v58_v21 = vld [vmem:[#allocation5 + $0x68] sm:$0xff]  ;;  %v259_v23 = vrot.slane %v41_v18, %v1403_v10  ;;  %v252_v24 = vcombine.high %v41_v18, %v41_v18  ;;  %v108_v30 = vld [vmem:[#allocation5 + $0x1f8] sm:$0xff]  ;;  %v1089_v35 = vpack.c.bf16 %v76_v28, %v75_v27 }
  0x3a   :  { %1080 = vmatpush3.bf16.msra.mxu0 %v1079_v3  ;;  %v89_v22 = vld [vmem:[#allocation5 + $0x160] sm:$0xff]  ;;  %v90_v26 = vld [vmem:[#allocation5 + $0x168] sm:$0xff]  ;;  %v1087_v33 = vpack.c.bf16 %v58_v21, %v57_v20  ;;  %v59_v36 = vld [vmem:[#allocation5 + $0x70] sm:$0xff]  ;;  %v1121_v40 = vpack.c.bf16 %v108_v30, %v107_v29 }
  0x3b   :  { %1082 = vmatprep.subr.bf16.mxu0 %v1081_v6  ;;  %v267_v31 = vcombine.high %v259_v23, %v259_v23  ;;  %v266_v32 = vrot.slane %v252_v24, %v1403_v10  ;;  %v1119_v34 = vpack.c.bf16 %v90_v26, %v89_v22  ;;  %v60_v37 = vld [vmem:[#allocation5 + $0x78] sm:$0xff]  ;;  %v91_v38 = vld [vmem:[#allocation5 + $0x170] sm:$0xff]  ;;  %v125_v42 = vld [vmem:[#allocation5 + $0x280] sm:$0xff] }
  0x3c   :  { %1112 = vmatpush3.bf16.msra.mxu1 %v1111_v5  ;;  %v92_v41 = vld [vmem:[#allocation5 + $0x178] sm:$0xff]  ;;  %v126_v43 = vld [vmem:[#allocation5 + $0x288] sm:$0xff]  ;;  %v157_v44 = vld [vmem:[#allocation5 + $0x380] sm:$0xff]  ;;  %v1091_v46 = vpack.c.bf16 %v60_v37, %v59_v36 }
  0x3d   :  { %1114 = vmatprep.subr.bf16.mxu1 %v1113_v11  ;;  %v268_v39 = vcombine.high %v266_v32, %v266_v32  ;;  %389 = vmatprep.mubr.f32.mxu0 %v267_v31  ;;  %v158_v45 = vld [vmem:[#allocation5 + $0x388] sm:$0xff]  ;;  %v1123_v47 = vpack.c.bf16 %v92_v41, %v91_v38  ;;  %v1125_v48 = vpack.c.bf16 %v126_v43, %v125_v42  ;;  %v109_v49 = vld [vmem:[#allocation5 + $0x200] sm:$0xff]  ;;  %v127_v54 = vld [vmem:[#allocation5 + $0x290] sm:$0xff] }
  0x3e   :  { %1084 = vmatpush3.bf16.msra.mxu0 %v1083_v16  ;;  %v110_v50 = vld [vmem:[#allocation5 + $0x208] sm:$0xff]  ;;  %v141_v51 = vld [vmem:[#allocation5 + $0x300] sm:$0xff]  ;;  %v1157_v52 = vpack.c.bf16 %v158_v45, %v157_v44  ;;  %v128_v55 = vld [vmem:[#allocation5 + $0x298] sm:$0xff] }
  0x3f   :  { %1086 = vmatprep.subr.bf16.mxu0 %v1085_v19  ;;  %459 = vmatprep.mubr.f32.mxu1 %v268_v39  ;;  %v142_v53 = vld [vmem:[#allocation5 + $0x308] sm:$0xff]  ;;  %v159_v56 = vld [vmem:[#allocation5 + $0x390] sm:$0xff]  ;;  %v160_v57 = vld [vmem:[#allocation5 + $0x398] sm:$0xff]  ;;  %v1127_v58 = vpack.c.bf16 %v110_v50, %v109_v49  ;;  %v1129_v60 = vpack.c.bf16 %v128_v55, %v127_v54 }
  0x40   :  { %1116 = vmatpush3.bf16.msra.mxu1 %v1115_v17  ;;  %v1159_v59 = vpack.c.bf16 %v142_v53, %v141_v51  ;;  %v111_v61 = vld [vmem:[#allocation5 + $0x210] sm:$0xff]  ;;  %v112_v62 = vld [vmem:[#allocation5 + $0x218] sm:$0xff]  ;;  %v1161_v0 = vpack.c.bf16 %v160_v57, %v159_v56  ;;  %v129_v2 = vld [vmem:[#allocation5 + $0x2a0] sm:$0xff] }
  0x41   :  { %1118 = vmatprep.subr.bf16.mxu1 %v1117_v25  ;;  %v143_v63 = vld [vmem:[#allocation5 + $0x310] sm:$0xff]  ;;  %v144_v1 = vld [vmem:[#allocation5 + $0x318] sm:$0xff]  ;;  %v130_v3 = vld [vmem:[#allocation5 + $0x2a8] sm:$0xff]  ;;  %v1131_v6 = vpack.c.bf16 %v112_v62, %v111_v61 }
  0x42   :  { %1088 = vmatpush3.bf16.msra.mxu0 %v1087_v33  ;;  %v161_v4 = vld [vmem:[#allocation5 + $0x3a0] sm:$0xff]  ;;  %v162_v5 = vld [vmem:[#allocation5 + $0x3a8] sm:$0xff]  ;;  %v1163_v7 = vpack.c.bf16 %v144_v1, %v143_v63  ;;  %v1133_v8 = vpack.c.bf16 %v130_v3, %v129_v2  ;;  %v131_v15 = vld [vmem:[#allocation5 + $0x2b0] sm:$0xff] }
  0x43   :  { %1090 = vmatprep.subr.bf16.mxu0 %v1089_v35  ;;  %v113_v9 = vld [vmem:[#allocation5 + $0x220] sm:$0xff]  ;;  %v114_v11 = vld [vmem:[#allocation5 + $0x228] sm:$0xff]  ;;  %v1165_v13 = vpack.c.bf16 %v162_v5, %v161_v4  ;;  %v132_v16 = vld [vmem:[#allocation5 + $0x2b8] sm:$0xff] }
  0x44   :  { %1120 = vmatpush3.bf16.msra.mxu1 %v1119_v34  ;;  %v145_v12 = vld [vmem:[#allocation5 + $0x320] sm:$0xff]  ;;  %v146_v14 = vld [vmem:[#allocation5 + $0x328] sm:$0xff]  ;;  %v163_v17 = vld [vmem:[#allocation5 + $0x3b0] sm:$0xff]  ;;  %v1135_v19 = vpack.c.bf16 %v114_v11, %v113_v9  ;;  %v1137_v22 = vpack.c.bf16 %v132_v16, %v131_v15 }
  0x45   :  { %1122 = vmatprep.subr.bf16.mxu1 %v1121_v40  ;;  %v164_v18 = vld [vmem:[#allocation5 + $0x3b8] sm:$0xff]  ;;  %v115_v20 = vld [vmem:[#allocation5 + $0x230] sm:$0xff]  ;;  %v1167_v21 = vpack.c.bf16 %v146_v14, %v145_v12  ;;  %v133_v27 = vld [vmem:[#allocation5 + $0x2c0] sm:$0xff] }
  0x46   :  { %1092 = vmatpush3.bf16.msra.mxu0 %v1091_v46  ;;  %v147_v24 = vld [vmem:[#allocation5 + $0x330] sm:$0xff]  ;;  %v148_v25 = vld [vmem:[#allocation5 + $0x338] sm:$0xff]  ;;  %v1169_v26 = vpack.c.bf16 %v164_v18, %v163_v17  ;;  %v134_v28 = vld [vmem:[#allocation5 + $0x2c8] sm:$0xff] }
  0x47   :  { %1126 = vmatprep.subr.bf16.mxu0 %v1125_v48  ;;  %v42_v29 = vld [vmem:[#allocation2 + $0x8] sm:$0xff]  ;;  %v165_v30 = vld [vmem:[#allocation5 + $0x3c0] sm:$0xff]  ;;  %v1171_v35 = vpack.c.bf16 %v148_v25, %v147_v24  ;;  %v1141_v36 = vpack.c.bf16 %v134_v28, %v133_v27  ;;  %v136_v45 = vld [vmem:[#allocation5 + $0x2d8] sm:$0xff] }
  0x48   :  { %1124 = vmatpush3.bf16.msra.mxu1 %v1123_v47  ;;  %v166_v31 = vld [vmem:[#allocation5 + $0x3c8] sm:$0xff]  ;;  %v269_v33 = vcombine.high %v42_v29, %v42_v29  ;;  %v117_v37 = vld [vmem:[#allocation5 + $0x240] sm:$0xff]  ;;  %v135_v44 = vld [vmem:[#allocation5 + $0x2d0] sm:$0xff] }
  0x49   :  { %1158 = vmatprep.subr.bf16.mxu1 %v1157_v52  ;;  %390 = vmatmul.mubr.f32.vlgmr.msra.gmra.mrb[0].mxu0 %v259_v23  ;;  %v116_v23 = vld [vmem:[#allocation5 + $0x238] sm:$0xff]  ;;  %v118_v38 = vld [vmem:[#allocation5 + $0x248] sm:$0xff]  ;;  %v149_v39 = vld [vmem:[#allocation5 + $0x340] sm:$0xff]  ;;  %v1173_v42 = vpack.c.bf16 %v166_v31, %v165_v30  ;;  %v1145_v51 = vpack.c.bf16 %v136_v45, %v135_v44 }
  0x4a   :  { %1128 = vmatpush3.bf16.msra.mxu0 %v1127_v58  ;;  %v1139_v34 = vpack.c.bf16 %v116_v23, %v115_v20  ;;  %v1413_v41 = vrot.slane %v269_v33, %v1403_v10  ;;  %v150_v43 = vld [vmem:[#allocation5 + $0x348] sm:$0xff]  ;;  %v167_v46 = vld [vmem:[#allocation5 + $0x3d0] sm:$0xff]  ;;  %v168_v47 = vld [vmem:[#allocation5 + $0x3d8] sm:$0xff]  ;;  %v1143_v49 = vpack.c.bf16 %v118_v38, %v117_v37 }
  0x4b   :  { %460 = vmatmul.mubr.f32.vlgmr.msra.gmra.mrb[0].mxu1 %v266_v32  ;;  %1130 = vmatprep.subr.bf16.mxu0 %v1129_v60  ;;  %v1408_v32 = vrot.slane %v42_v29, %v1403_v10  ;;  %v1175_v50 = vpack.c.bf16 %v150_v43, %v149_v39  ;;  %v119_v52 = vld [vmem:[#allocation5 + $0x250] sm:$0xff]  ;;  %v120_v53 = vld [vmem:[#allocation5 + $0x258] sm:$0xff]  ;;  %v1177_v55 = vpack.c.bf16 %v168_v47, %v167_v46  ;;  %v137_v57 = vld [vmem:[#allocation5 + $0x2e0] sm:$0xff] }
  0x4c   :  { %1160 = vmatpush3.bf16.msra.mxu1 %v1159_v59  ;;  %v285_v48 = vcombine.high %v1413_v41, %v1413_v41  ;;  %v151_v54 = vld [vmem:[#allocation5 + $0x350] sm:$0xff]  ;;  %v152_v56 = vld [vmem:[#allocation5 + $0x358] sm:$0xff]  ;;  %v138_v58 = vld [vmem:[#allocation5 + $0x2e8] sm:$0xff]  ;;  %v1147_v61 = vpack.c.bf16 %v120_v53, %v119_v52 }
  0x4d   :  { %1162 = vmatprep.subr.bf16.mxu1 %v1161_v0  ;;  %v284_v40 = vcombine.high %v1408_v32, %v1408_v32  ;;  %v169_v59 = vld [vmem:[#allocation5 + $0x3e0] sm:$0xff]  ;;  %v170_v60 = vld [vmem:[#allocation5 + $0x3e8] sm:$0xff]  ;;  %v1179_v62 = vpack.c.bf16 %v152_v56, %v151_v54  ;;  %v1149_v63 = vpack.c.bf16 %v138_v58, %v137_v57  ;;  %v139_v5 = vld [vmem:[#allocation5 + $0x2f0] sm:$0xff] }
  0x4e   :  { %1132 = vmatpush3.bf16.msra.mxu0 %v1131_v6  ;;  %599 = vmatprep.mubr.f32.mxu1 %v285_v48  ;;  %v121_v0 = vld [vmem:[#allocation5 + $0x260] sm:$0xff]  ;;  %v122_v1 = vld [vmem:[#allocation5 + $0x268] sm:$0xff]  ;;  %v1181_v3 = vpack.c.bf16 %v170_v60, %v169_v59  ;;  %v140_v6 = vld [vmem:[#allocation5 + $0x2f8] sm:$0xff] }
  0x4f   :  { %1134 = vmatprep.subr.bf16.mxu0 %v1133_v8  ;;  %529 = vmatprep.mubr.f32.mxu0 %v284_v40  ;;  %v153_v2 = vld [vmem:[#allocation5 + $0x360] sm:$0xff]  ;;  %v154_v4 = vld [vmem:[#allocation5 + $0x368] sm:$0xff]  ;;  %v172_v8 = vld [vmem:[#allocation5 + $0x3f8] sm:$0xff]  ;;  %v1151_v9 = vpack.c.bf16 %v122_v1, %v121_v0  ;;  %v1153_v12 = vpack.c.bf16 %v140_v6, %v139_v5 }
  0x50   :  { %1164 = vmatpush3.bf16.msra.mxu1 %v1163_v7  ;;  %v171_v7 = vld [vmem:[#allocation5 + $0x3f0] sm:$0xff]  ;;  %v1183_v11 = vpack.c.bf16 %v154_v4, %v153_v2  ;;  %v124_v14 = vld [vmem:[#allocation5 + $0x278] sm:$0xff]  ;;  %v189_v18 = vld [vmem:[#allocation5 + $0x480] sm:$0xff] }
  0x51   :  { %1166 = vmatprep.subr.bf16.mxu1 %v1165_v13  ;;  %v123_v13 = vld [vmem:[#allocation5 + $0x270] sm:$0xff]  ;;  %v1185_v16 = vpack.c.bf16 %v172_v8, %v171_v7  ;;  %v156_v17 = vld [vmem:[#allocation5 + $0x378] sm:$0xff]  ;;  %v221_v20 = vld [vmem:[#allocation5 + $0x580] sm:$0xff] }
  0x52   :  { %1136 = vmatpush3.bf16.msra.mxu0 %v1135_v19  ;;  %v155_v15 = vld [vmem:[#allocation5 + $0x370] sm:$0xff]  ;;  %v190_v19 = vld [vmem:[#allocation5 + $0x488] sm:$0xff]  ;;  %v173_v23 = vld [vmem:[#allocation5 + $0x400] sm:$0xff] }
  0x53   :  { %1138 = vmatprep.subr.bf16.mxu0 %v1137_v22  ;;  %v1155_v22 = vpack.c.bf16 %v124_v14, %v123_v13  ;;  %v1187_v24 = vpack.c.bf16 %v156_v17, %v155_v15  ;;  %v1189_v25 = vpack.c.bf16 %v190_v19, %v189_v18  ;;  %v205_v27 = vld [vmem:[#allocation5 + $0x500] sm:$0xff]  ;;  %v206_v28 = vld [vmem:[#allocation5 + $0x508] sm:$0xff]  ;;  %v191_v30 = vld [vmem:[#allocation5 + $0x490] sm:$0xff] }
  0x54   :  { %1168 = vmatpush3.bf16.msra.mxu1 %v1167_v21  ;;  %v222_v21 = vld [vmem:[#allocation5 + $0x588] sm:$0xff]  ;;  %v192_v31 = vld [vmem:[#allocation5 + $0x498] sm:$0xff]  ;;  %v223_v33 = vld [vmem:[#allocation5 + $0x590] sm:$0xff] }
  0x55   :  { %1170 = vmatprep.subr.bf16.mxu1 %v1169_v26  ;;  %v174_v26 = vld [vmem:[#allocation5 + $0x408] sm:$0xff]  ;;  %v1221_v29 = vpack.c.bf16 %v222_v21, %v221_v20  ;;  %v43_v37 = vld [vmem:[#allocation2 + $0x10] sm:$0xff]  ;;  %v1193_v38 = vpack.c.bf16 %v192_v31, %v191_v30  ;;  %v193_v47 = vld [vmem:[#allocation5 + $0x4a0] sm:$0xff] }
  0x56   :  { %1140 = vmatpush3.bf16.msra.mxu0 %v1139_v34  ;;  %v224_v34 = vld [vmem:[#allocation5 + $0x598] sm:$0xff]  ;;  %v175_v39 = vld [vmem:[#allocation5 + $0x410] sm:$0xff]  ;;  %v1418_v43 = vrot.slane %v43_v37, %v1403_v10  ;;  %v286_v44 = vcombine.high %v43_v37, %v43_v37  ;;  %v194_v48 = vld [vmem:[#allocation5 + $0x4a8] sm:$0xff] }
  0x57   :  { %1142 = vmatprep.subr.bf16.mxu0 %v1141_v36  ;;  %v1223_v36 = vpack.c.bf16 %v206_v28, %v205_v27  ;;  %v176_v40 = vld [vmem:[#allocation5 + $0x418] sm:$0xff]  ;;  %v1225_v45 = vpack.c.bf16 %v224_v34, %v223_v33  ;;  %v177_v56 = vld [vmem:[#allocation5 + $0x420] sm:$0xff]  ;;  %v178_v57 = vld [vmem:[#allocation5 + $0x428] sm:$0xff] }
  0x58   :  { %1172 = vmatpush3.bf16.msra.mxu1 %v1171_v35  ;;  %v1191_v35 = vpack.c.bf16 %v174_v26, %v173_v23  ;;  %v208_v46 = vld [vmem:[#allocation5 + $0x518] sm:$0xff]  ;;  %v1424_v52 = vrot.slane %v286_v44, %v1403_v10  ;;  %v1195_v53 = vpack.c.bf16 %v176_v40, %v175_v39  ;;  %v209_v58 = vld [vmem:[#allocation5 + $0x520] sm:$0xff]  ;;  %v210_v60 = vld [vmem:[#allocation5 + $0x528] sm:$0xff] }
  0x59   :  { %1174 = vmatprep.subr.bf16.mxu1 %v1173_v42  ;;  %v207_v42 = vld [vmem:[#allocation5 + $0x510] sm:$0xff]  ;;  %v196_v10 = vld [vmem:[#allocation5 + $0x4b8] sm:$0xff]  ;;  %v1231_v0 = vpack.c.bf16 %v210_v60, %v209_v58  ;;  %v197_v7 = vld [vmem:[#allocation5 + $0x4c0] sm:$0xff] }
  0x5a   :  { %1144 = vmatpush3.bf16.msra.mxu0 %v1143_v49  ;;  %v225_v49 = vld [vmem:[#allocation5 + $0x5a0] sm:$0xff]  ;;  %v1227_v54 = vpack.c.bf16 %v208_v46, %v207_v42  ;;  %v179_v2 = vld [vmem:[#allocation5 + $0x430] sm:$0xff]  ;;  %v212_v6 = vld [vmem:[#allocation5 + $0x538] sm:$0xff] }
  0x5b   :  { %1146 = vmatprep.subr.bf16.mxu0 %v1145_v51  ;;  %v301_v51 = vcombine.high %v1418_v43, %v1418_v43  ;;  %v211_v4 = vld [vmem:[#allocation5 + $0x530] sm:$0xff]  ;;  %v198_v8 = vld [vmem:[#allocation5 + $0x4c8] sm:$0xff]  ;;  %v181_v15 = vld [vmem:[#allocation5 + $0x440] sm:$0xff] }
  0x5c   :  { %1176 = vmatpush3.bf16.msra.mxu1 %v1175_v50  ;;  %v226_v50 = vld [vmem:[#allocation5 + $0x5a8] sm:$0xff]  ;;  %v1235_v13 = vpack.c.bf16 %v212_v6, %v211_v4  ;;  %v1205_v14 = vpack.c.bf16 %v198_v8, %v197_v7  ;;  %v213_v17 = vld [vmem:[#allocation5 + $0x540] sm:$0xff]  ;;  %v199_v20 = vld [vmem:[#allocation5 + $0x4d0] sm:$0xff] }
  0x5d   :  { %1178 = vmatprep.subr.bf16.mxu1 %v1177_v55  ;;  %v1197_v55 = vpack.c.bf16 %v194_v48, %v193_v47  ;;  %v1229_v59 = vpack.c.bf16 %v226_v50, %v225_v49  ;;  %v214_v19 = vld [vmem:[#allocation5 + $0x548] sm:$0xff]  ;;  %v200_v21 = vld [vmem:[#allocation5 + $0x4d8] sm:$0xff]  ;;  %v183_v27 = vld [vmem:[#allocation5 + $0x450] sm:$0xff] }
  0x5e   :  { %1148 = vmatpush3.bf16.msra.mxu0 %v1147_v61  ;;  %v195_v61 = vld [vmem:[#allocation5 + $0x4b0] sm:$0xff]  ;;  %v232_v23 = vld [vmem:[#allocation5 + $0x5d8] sm:$0xff]  ;;  %v1209_v26 = vpack.c.bf16 %v200_v21, %v199_v20  ;;  %v201_v33 = vld [vmem:[#allocation5 + $0x4e0] sm:$0xff] }
  0x5f   :  { %1150 = vmatprep.subr.bf16.mxu0 %v1149_v63  ;;  %v228_v63 = vld [vmem:[#allocation5 + $0x5b8] sm:$0xff]  ;;  %v1201_v1 = vpack.c.bf16 %v196_v10, %v195_v61  ;;  %v202_v34 = vld [vmem:[#allocation5 + $0x4e8] sm:$0xff]  ;;  %v185_v40 = vld [vmem:[#allocation5 + $0x460] sm:$0xff] }
  0x60   :  { %1180 = vmatpush3.bf16.msra.mxu1 %v1179_v62  ;;  %v227_v62 = vld [vmem:[#allocation5 + $0x5b0] sm:$0xff]  ;;  %v184_v28 = vld [vmem:[#allocation5 + $0x458] sm:$0xff]  ;;  %v1213_v39 = vpack.c.bf16 %v202_v34, %v201_v33  ;;  %v186_v42 = vld [vmem:[#allocation5 + $0x468] sm:$0xff] }
  0x61   :  { %1182 = vmatprep.subr.bf16.mxu1 %v1181_v3  ;;  %v180_v3 = vld [vmem:[#allocation5 + $0x438] sm:$0xff]  ;;  %v1233_v5 = vpack.c.bf16 %v228_v63, %v227_v62  ;;  %v1211_v37 = vpack.c.bf16 %v184_v28, %v183_v27  ;;  %v217_v44 = vld [vmem:[#allocation5 + $0x560] sm:$0xff]  ;;  %v218_v46 = vld [vmem:[#allocation5 + $0x568] sm:$0xff]  ;;  %v1348_v63 = vmov 0.0|0.0  }
  0x62   :  { %1152 = vmatpush3.bf16.msra.mxu0 %v1151_v9  ;;  %v229_v9 = vld [vmem:[#allocation5 + $0x5c0] sm:$0xff]  ;;  %v216_v31 = vld [vmem:[#allocation5 + $0x558] sm:$0xff]  ;;  %v203_v47 = vld [vmem:[#allocation5 + $0x4f0] sm:$0xff] }
  0x63   :  { %1154 = vmatprep.subr.bf16.mxu0 %v1153_v12  ;;  %v1203_v12 = vpack.c.bf16 %v180_v3, %v179_v2  ;;  %v204_v48 = vld [vmem:[#allocation5 + $0x4f8] sm:$0xff]  ;;  %v235_v49 = vld [vmem:[#allocation5 + $0x5f0] sm:$0xff]  ;;  %v237_v61 = vld [vmem:[#allocation5 + $0x600] sm:$0xff]  ;;  %v1350_v2 = vmov 0.0  }
  0x64   :  { %1184 = vmatpush3.bf16.msra.mxu1 %v1183_v11  ;;  %v230_v11 = vld [vmem:[#allocation5 + $0x5c8] sm:$0xff]  ;;  %v236_v50 = vld [vmem:[#allocation5 + $0x5f8] sm:$0xff]  ;;  %v219_v58 = vld [vmem:[#allocation5 + $0x570] sm:$0xff] }
  0x65   :  { %1186 = vmatprep.subr.bf16.mxu1 %v1185_v16  ;;  %v182_v16 = vld [vmem:[#allocation5 + $0x448] sm:$0xff]  ;;  %v1237_v18 = vpack.c.bf16 %v230_v11, %v229_v9  ;;  %v833_v3 = vld.sshfl [vmem:[#allocation2 + $0x18] sm:$0x3 pattern:$0x76325410] }
  0x66   :  { %1156 = vmatpush3.bf16.msra.mxu0 %v1155_v22  ;;  %v231_v22 = vld [vmem:[#allocation5 + $0x5d0] sm:$0xff]  ;;  %v238_v10 = vld [vmem:[#allocation5 + $0x608] sm:$0xff] }
  0x67   :  { %1190 = vmatprep.subr.bf16.mxu0 %v1189_v25  ;;  %v1239_v25 = vpack.c.bf16 %v214_v19, %v213_v17  ;;  %v1241_v30 = vpack.c.bf16 %v232_v23, %v231_v22  ;;  %v1254_v62 = vpack.c.bf16 %v238_v10, %v237_v61 }
  0x68   :  { %1188 = vmatpush3.bf16.msra.mxu1 %v1187_v24  ;;  %v1207_v24 = vpack.c.bf16 %v182_v16, %v181_v15 }
  0x69   :  { %1222 = vmatprep.subr.bf16.mxu1 %v1221_v29  ;;  %530 = vmatmul.mubr.f32.vlgmr.msra.gmra.mrb[2].mxu0 %v1408_v32  ;;  %v302_v32 = vcombine.high %v1424_v52, %v1424_v52  ;;  %v215_v29 = vld [vmem:[#allocation5 + $0x550] sm:$0xff] }
  0x6a   :  { %1192 = vmatpush3.bf16.msra.mxu0 %v1191_v35  ;;  %669 = vmatprep.mubr.f32.mxu0 %v301_v51  ;;  %v233_v35 = vld [vmem:[#allocation5 + $0x5e0] sm:$0xff]  ;;  %v1215_v51 = vpack.c.bf16 %v186_v42, %v185_v40 }
  0x6b   :  { %600 = vmatmul.mubr.f32.vlgmr.msra.gmra.mrb[2].mxu1 %v1413_v41  ;;  %1194 = vmatprep.subr.bf16.mxu0 %v1193_v38  ;;  %v1199_v41 = vpack.c.bf16 %v178_v57, %v177_v56  ;;  %v1243_v38 = vpack.c.bf16 %v216_v31, %v215_v29  ;;  %v188_v56 = vld [vmem:[#allocation5 + $0x478] sm:$0xff]  ;;  %v1249_v57 = vpack.c.bf16 %v236_v50, %v235_v49 }
  0x6c   :  { %1224 = vmatpush3.bf16.msra.mxu1 %v1223_v36  ;;  %739 = vmatprep.mubr.f32.mxu1 %v302_v32  ;;  %v234_v36 = vld [vmem:[#allocation5 + $0x5e8] sm:$0xff]  ;;  %v220_v32 = vld [vmem:[#allocation5 + $0x578] sm:$0xff] }
  0x6d   :  { %1226 = vmatprep.subr.bf16.mxu1 %v1225_v45  ;;  %v1245_v45 = vpack.c.bf16 %v234_v36, %v233_v35  ;;  %v1251_v60 = vpack.c.bf16 %v220_v32, %v219_v58 }
  0x6e   :  { %1196 = vmatpush3.bf16.msra.mxu0 %v1195_v53  ;;  %v1247_v53 = vpack.c.bf16 %v218_v46, %v217_v44 }
  0x6f   :  { %1198 = vmatprep.subr.bf16.mxu0 %v1197_v55  ;;  %v187_v55 = vld [vmem:[#allocation5 + $0x470] sm:$0xff] }
  0x70   :  { %1228 = vmatpush3.bf16.msra.mxu1 %v1227_v54  ;;  %v1217_v54 = vpack.c.bf16 %v204_v48, %v203_v47 }
  0x71   :  { %1230 = vmatprep.subr.bf16.mxu1 %v1229_v59  ;;  %v1219_v59 = vpack.c.bf16 %v188_v56, %v187_v55 }
  0x72   :  { %1200 = vmatpush3.bf16.msra.mxu0 %v1199_v41  ;;  %v239_v41 = vld [vmem:[#allocation5 + $0x610] sm:$0xff] }
  0x73   :  { %1202 = vmatprep.subr.bf16.mxu0 %v1201_v1 }
  0x74   :  { %1232 = vmatpush3.bf16.msra.mxu1 %v1231_v0  ;;  %v240_v0 = vld [vmem:[#allocation5 + $0x618] sm:$0xff] }
  0x75   :  { %1234 = vmatprep.subr.bf16.mxu1 %v1233_v5  ;;  %v1257_v1 = vpack.c.bf16 %v240_v0, %v239_v41  ;;  %v832_v5 = vld [vmem:[%s1448_s2] ss:$0 sm:$0xff]  ;;  %s1351_s2 = smov [#allocation7]  }
  0x76   :  { %1204 = vmatpush3.bf16.msra.mxu0 %v1203_v12  ;;  %s822_s11 = sshll.u32 %s1351_s2, 4  ;;  %s823_s11 = int_to_ptr.vmem [resolvable:$true] %s822_s11 }
  0x77   :  { %1206 = vmatprep.subr.bf16.mxu0 %v1205_v14  ;;  %s1315_s12 = scalar_lea.vmem %s823_s11, 32  ;;  %p1320_p3 = scmp.lt.s32.totalorder %s823_s11, %s823_s11 }
  0x78   :  { %1236 = vmatpush3.bf16.msra.mxu1 %v1235_v13  ;;  %p1316_p2 = scmp.ne.s32.totalorder %s823_s11, %s1315_s12  ;;  %p1321_p4 = scmp.lt.s32.totalorder %s1315_s12, %s1315_s12 }
  0x79   :  { %1238 = vmatprep.subr.bf16.mxu1 %v1237_v18 }
  0x7a   :  { %1208 = vmatpush3.bf16.msra.mxu0 %v1207_v24  ;;  %p1322_p5 = por %p1321_p4, %p1320_p3 }
  0x7b   :  { %1210 = vmatprep.subr.bf16.mxu0 %v1209_v26 }
  0x7c   :  { %1240 = vmatpush3.bf16.msra.mxu1 %v1239_v25  ;;  %p1323_p6 = pnand %p1322_p5, %p1316_p2 }
  0x7d   :  { %1242 = vmatprep.subr.bf16.mxu1 %v1241_v30 }
  0x7e   :  { %1212 = vmatpush3.bf16.msra.mxu0 %v1211_v37 }
  0x7f   :  { %1214 = vmatprep.subr.bf16.mxu0 %v1213_v39 }
  0x80   :  { %1244 = vmatpush3.bf16.msra.mxu1 %v1243_v38 }
  0x81   :  { %1246 = vmatprep.subr.bf16.mxu1 %v1245_v45 }
  0x82   :  { %1216 = vmatpush3.bf16.msra.mxu0 %v1215_v51 }
  0x83   :  { %1218 = vmatprep.subr.bf16.mxu0 %v1217_v54 }
  0x84   :  { %1248 = vmatpush3.bf16.msra.mxu1 %v1247_v53 }
  0x85   :  { %1250 = vmatprep.subr.bf16.mxu1 %v1249_v57 }
  0x86   :  { %1220 = vmatpush3.bf16.msra.mxu0 %v1219_v59 }
  0x87   :  { %1253 = vmatprep.subr.bf16.mxu0 %v1348_v63 }
  0x88   :  { %1252 = vmatpush3.bf16.msra.mxu1 %v1251_v60 }
  0x89   :  { %670 = vmatmul.mubr.f32.vlgmr.msra.gmra.mrb[4].mxu0 %v1418_v43 }
  0x8a   :  { %1255 = vmatpush3.bf16.msra.mxu0 %v1254_v62  ;;  %1058 = vmatprep.mubr.msk.f32.mxu0 %vm1349_vm0, %v1350_v2 }
  0x8b   :  { %740 = vmatmul.mubr.f32.vlgmr.msra.gmra.mrb[4].mxu1 %v1424_v52  ;;  %1256 = vmatprep.subr.bf16.mxu0 %v1348_v63 }
  0x8e   :  { %1258 = vmatpush3.bf16.msra.mxu0 %v1257_v1 }
  0x91   :  { %1059 = vmatmul.mubr.msk.f32.vlgmr.msra.gmra.mrb[6].mxu0 %vm322_vm1, %v833_v3 }
 0x11c   :  { %v867_v4 = vpop.f32.mrb[0].mxu0 }
 0x11d   :  { %v868_v6 = vpop.f32.mrb[1].mxu0 }
 0x11e   :  { %v902_v7 = vpop.f32.mrb[0].mxu1  ;;  %v869_v43 = vadd.f32 %v868_v6, %v867_v4 }
 0x11f   :  { %v903_v8 = vpop.f32.mrb[1].mxu1 }
 0x120   :  { %v904_v9 = vadd.f32 %v903_v8, %v902_v7  ;;  %v392_v52 = vadd.f32 %v869_v43, %v832_v5 }
 0x122   :  { %v462_v11 = vadd.f32 %v904_v9, %v392_v52 }
 0x13c   :  { %v937_v12 = vpop.f32.mrb[2].mxu0 }
 0x13d   :  { %v938_v13 = vpop.f32.mrb[3].mxu0 }
 0x13e   :  { %v972_v14 = vpop.f32.mrb[2].mxu1  ;;  %v939_v15 = vadd.f32 %v938_v13, %v937_v12 }
 0x13f   :  { %v973_v16 = vpop.f32.mrb[3].mxu1 }
 0x140   :  { %v974_v17 = vadd.f32 %v973_v16, %v972_v14  ;;  %v532_v18 = vadd.f32 %v939_v15, %v462_v11 }
 0x142   :  { %v602_v19 = vadd.f32 %v974_v17, %v532_v18 }
 0x15c   :  { %v1007_v20 = vpop.f32.mrb[4].mxu0 }
 0x15d   :  { %v1008_v21 = vpop.f32.mrb[5].mxu0 }
 0x15e   :  { %v1042_v22 = vpop.f32.mrb[4].mxu1  ;;  %v1009_v23 = vadd.f32 %v1008_v21, %v1007_v20 }
 0x15f   :  { %v1043_v24 = vpop.f32.mrb[5].mxu1 }
 0x160   :  { %v1044_v25 = vadd.f32 %v1043_v24, %v1042_v22  ;;  %v672_v26 = vadd.f32 %v1009_v23, %v602_v19 }
 0x162   :  { %v742_v27 = vadd.f32 %v1044_v25, %v672_v26 }
 0x164   :  { %v811_v28 = vpop.f32.mrb[6].mxu0 }
 0x165   :  { %v812_v29 = vadd.f32 %v811_v28, %v742_v27  ;;  %v1060_v30 = vpop.f32.mrb[7].mxu0 }
 0x167   :  { %815 = vst [vmem:[#allocation7] sm:$0x3] %v812_v29 }
 0x168   :  { %1326 = shalt.err (!%p1323_p6)
}
 0x169   :  { %s1327_s15 = scalar_lea.hbm %s1449_s3, 32 }
 0x16a   :  { %p1328_p7 = scmp.ne.s32.totalorder %s1449_s3, %s1327_s15  ;;  %p1331_p8 = scmp.lt.u32.totalorder %s1327_s15, %s1449_s3 }
 0x16c   :  { %p1333_p9 = pnand %p1331_p8, %p1328_p7 }
 0x16e   :  { %1336 = shalt.err (!%p1333_p9)
}
 0x16f   :  { %825 = dma.vmem_to_hbm [thread:$0]  %s823_s11, 32, %s1449_s3, [#allocation4]  }
 0x170   :  { %1341 = dma.done.wait [#allocation4], 32  }
 0x171   :  { %1342 = vsyncadd [#allocation4], 4294967264 }
 0x172   :  { %829 = vsyncpa [#allocation3], 1 }
 0x173   :  { %830 = vsyncpa [#allocation6], 1 }
 0x174   :  { %831 = vsyncpa [#allocation4], 1 }

// kernel: tpu_custom_call.1
= control target key start
LH: loop header
LB: loop body
LE: loop exit
PB: predicated region body
PF: predicated region fallthrough
CT: control target
= control target key end

     0   :  { %8 = vsyncpa [#allocation3], 0  ;;  %s1446_s0 = inlined_call_operand.hbm [shape: f32[2,1568], index: 0, kind: input, shape index: {}]   ;;  %s1447_s1 = inlined_call_operand.hbm [shape: f32[1568,128], index: 1, kind: input, shape index: {}]   ;;  %s1448_s2 = inlined_call_operand.vmem [shape: f32[1,128], index: 2, kind: input, shape index: {}]   ;;  %s1449_s3 = inlined_call_operand.hbm [shape: f32[2,128], index: 3, kind: output, shape index: {}]  }
   0x1   :  { %9 = vsyncpa [#allocation6], 0 }
   0x2   :  { %10 = vsyncpa [#allocation4], 0  ;;  %s1343_s12 = smov [#allocation2]   ;;  %s1344_s14 = smov [#allocation5]  }
   0x3   :  { %s17_s13 = sshll.u32 %s1343_s12, 4  ;;  %s26_s15 = sshll.u32 %s1344_s14, 4  ;;  %s18_s13 = int_to_ptr.vmem [resolvable:$true] %s17_s13  ;;  %s1372_s15 = int_to_ptr.vmem [resolvable:$true] %s26_s15 }
   0x4   :  { %s1271_s18 = scalar_lea.hbm %s1446_s0, 416 }
   0x5   :  { %p1272_p0 = scmp.ne.s32.totalorder %s1446_s0, %s1271_s18  ;;  %p1275_p1 = scmp.lt.u32.totalorder %s1271_s18, %s1446_s0 }
   0x7   :  { %p1277_p2 = pnand %p1275_p1, %p1272_p0 }
   0x9   :  { %1280 = shalt.err (!%p1277_p2)
}
   0xa   :  { %s1281_s23 = scalar_lea.vmem %s18_s13, 416  ;;  %p1286_p4 = scmp.lt.s32.totalorder %s18_s13, %s18_s13 }
   0xb   :  { %p1282_p3 = scmp.ne.s32.totalorder %s18_s13, %s1281_s23  ;;  %p1287_p5 = scmp.lt.s32.totalorder %s1281_s23, %s1281_s23 }
   0xd   :  { %p1288_p6 = por %p1287_p5, %p1286_p4 }
   0xf   :  { %p1289_p7 = pnand %p1288_p6, %p1282_p3 }
  0x11   :  { %1292 = shalt.err (!%p1289_p7)
}
  0x12   :  { %20 = dma.hbm_to_vmem [thread:$0]  %s1446_s0, 416, %s18_s13, [#allocation3]  }
  0x13   :  { %s1293_s28 = scalar_lea.hbm %s1447_s1, 25088 }
  0x14   :  { %p1294_p8 = scmp.ne.s32.totalorder %s1447_s1, %s1293_s28  ;;  %p1297_p9 = scmp.lt.u32.totalorder %s1293_s28, %s1447_s1 }
  0x16   :  { %p1299_p10 = pnand %p1297_p9, %p1294_p8 }
  0x18   :  { %1302 = shalt.err (!%p1299_p10)
}
  0x19   :  { %s1303_s6 = scalar_lea.vmem %s1372_s15, 25088  ;;  %p1308_p12 = scmp.lt.s32.totalorder %s1372_s15, %s1372_s15 }
  0x1a   :  { %p1304_p11 = scmp.ne.s32.totalorder %s1372_s15, %s1303_s6  ;;  %p1309_p13 = scmp.lt.s32.totalorder %s1303_s6, %s1303_s6 }
  0x1c   :  { %p1310_p0 = por %p1309_p13, %p1308_p12 }
  0x1e   :  { %p1311_p1 = pnand %p1310_p0, %p1304_p11 }
  0x20   :  { %1314 = shalt.err (!%p1311_p1)
}
  0x21   :  { %s1345_s0 = smov 128   ;;  %s1346_s7 = smov 8  }
  0x22   :  { %32 = dma.hbm_to_vmem [thread:$0]  %s1447_s1, 25088, %s1372_s15, [#allocation6], %s1345_s0, %s1345_s0, %s1346_s7  }
  0x23   :  { %1337 = dma.done.wait [#allocation3], 416  }
  0x24   :  { %1338 = vsyncadd [#allocation3], 4294966880 }
  0x25   :  { %1339 = dma.done.wait [#allocation6], 25088  }
  0x26   :  { %1340 = vsyncadd [#allocation6], 4294942208  ;;  %v61_v0 = vld [vmem:[#allocation5 + $0x80] sm:$0xff]  ;;  %v62_v1 = vld [vmem:[#allocation5 + $0x88] sm:$0xff]  ;;  %v1347_v43 = vmov 1983009808   ;;  %v256_v45 = vlaneseq }
  0x27   :  { %v45_v2 = vld [vmem:[#allocation5] sm:$0xff]  ;;  %v1061_v3 = vpack.c.bf16 %v62_v1, %v61_v0  ;;  %v46_v4 = vld [vmem:[#allocation5 + $0x8] sm:$0xff]  ;;  %v63_v11 = vld [vmem:[#allocation5 + $0x90] sm:$0xff]  ;;  %v254_v44 = vunpack.c.l.s4 %v1347_v43  ;;  %vm1349_vm0 = vmmov 0   ;;  %vm322_vm1 = vcmask 261120  }
  0x28   :  { %v93_v5 = vld [vmem:[#allocation5 + $0x180] sm:$0xff]  ;;  %v94_v6 = vld [vmem:[#allocation5 + $0x188] sm:$0xff]  ;;  %v1063_v7 = vpack.c.bf16 %v46_v4, %v45_v2  ;;  %v64_v13 = vld [vmem:[#allocation5 + $0x98] sm:$0xff]  ;;  %v257_v60 = vshrl.u32 %v256_v45, 7 }
  0x29   :  { %v1093_v8 = vpack.c.bf16 %v94_v6, %v93_v5  ;;  %v77_v9 = vld [vmem:[#allocation5 + $0x100] sm:$0xff]  ;;  %v78_v10 = vld [vmem:[#allocation5 + $0x108] sm:$0xff]  ;;  %1062 = vmatprep.subr.bf16.mxu0 %v1061_v3  ;;  %v47_v14 = vld [vmem:[#allocation5 + $0x10] sm:$0xff]  ;;  %v1065_v16 = vpack.c.bf16 %v64_v13, %v63_v11  ;;  %v255_v59 = vunpack.c.0.s8 %v254_v44 }
  0x2a   :  { %v1095_v12 = vpack.c.bf16 %v78_v10, %v77_v9  ;;  %v48_v15 = vld [vmem:[#allocation5 + $0x18] sm:$0xff]  ;;  %1064 = vmatpush3.bf16.msra.mxu0 %v1063_v7  ;;  %v95_v18 = vld [vmem:[#allocation5 + $0x190] sm:$0xff]  ;;  %v65_v23 = vld [vmem:[#allocation5 + $0xa0] sm:$0xff] }
  0x2b   :  { %1094 = vmatprep.subr.bf16.mxu1 %v1093_v8  ;;  %v1067_v17 = vpack.c.bf16 %v48_v15, %v47_v14  ;;  %v96_v19 = vld [vmem:[#allocation5 + $0x198] sm:$0xff]  ;;  %v79_v20 = vld [vmem:[#allocation5 + $0x110] sm:$0xff]  ;;  %v66_v24 = vld [vmem:[#allocation5 + $0xa8] sm:$0xff]  ;;  %1066 = vmatprep.subr.bf16.mxu0 %v1065_v16  ;;  %v1403_v10 = vsub.s32 %v255_v59, %v257_v60 }
  0x2c   :  { %1096 = vmatpush3.bf16.msra.mxu1 %v1095_v12  ;;  %v1097_v21 = vpack.c.bf16 %v96_v19, %v95_v18  ;;  %v80_v22 = vld [vmem:[#allocation5 + $0x118] sm:$0xff]  ;;  %v1069_v26 = vpack.c.bf16 %v66_v24, %v65_v23  ;;  %v49_v27 = vld [vmem:[#allocation5 + $0x20] sm:$0xff]  ;;  %v50_v28 = vld [vmem:[#allocation5 + $0x28] sm:$0xff] }
  0x2d   :  { %v1099_v25 = vpack.c.bf16 %v80_v22, %v79_v20  ;;  %v97_v29 = vld [vmem:[#allocation5 + $0x1a0] sm:$0xff]  ;;  %v98_v30 = vld [vmem:[#allocation5 + $0x1a8] sm:$0xff]  ;;  %v1071_v33 = vpack.c.bf16 %v50_v28, %v49_v27  ;;  %v67_v35 = vld [vmem:[#allocation5 + $0xb0] sm:$0xff] }
  0x2e   :  { %1098 = vmatprep.subr.bf16.mxu1 %v1097_v21  ;;  %v81_v31 = vld [vmem:[#allocation5 + $0x120] sm:$0xff]  ;;  %v82_v32 = vld [vmem:[#allocation5 + $0x128] sm:$0xff]  ;;  %1068 = vmatpush3.bf16.msra.mxu0 %v1067_v17  ;;  %v1101_v34 = vpack.c.bf16 %v98_v30, %v97_v29  ;;  %v68_v36 = vld [vmem:[#allocation5 + $0xb8] sm:$0xff] }
  0x2f   :  { %v51_v37 = vld [vmem:[#allocation5 + $0x30] sm:$0xff]  ;;  %1070 = vmatprep.subr.bf16.mxu0 %v1069_v26  ;;  %v1103_v38 = vpack.c.bf16 %v82_v32, %v81_v31  ;;  %v1073_v39 = vpack.c.bf16 %v68_v36, %v67_v35  ;;  %v52_v40 = vld [vmem:[#allocation5 + $0x38] sm:$0xff]  ;;  %v69_v49 = vld [vmem:[#allocation5 + $0xc0] sm:$0xff] }
  0x30   :  { %1100 = vmatpush3.bf16.msra.mxu1 %v1099_v25  ;;  %v99_v41 = vld [vmem:[#allocation5 + $0x1b0] sm:$0xff]  ;;  %v100_v42 = vld [vmem:[#allocation5 + $0x1b8] sm:$0xff]  ;;  %v70_v50 = vld [vmem:[#allocation5 + $0xc8] sm:$0xff]  ;;  %v1075_v51 = vpack.c.bf16 %v52_v40, %v51_v37 }
  0x31   :  { %1102 = vmatprep.subr.bf16.mxu1 %v1101_v34  ;;  %v1105_v46 = vpack.c.bf16 %v100_v42, %v99_v41  ;;  %v83_v47 = vld [vmem:[#allocation5 + $0x130] sm:$0xff]  ;;  %v84_v48 = vld [vmem:[#allocation5 + $0x138] sm:$0xff]  ;;  %v101_v52 = vld [vmem:[#allocation5 + $0x1c0] sm:$0xff]  ;;  %v1077_v55 = vpack.c.bf16 %v70_v50, %v69_v49 }
  0x32   :  { %1072 = vmatpush3.bf16.msra.mxu0 %v1071_v33  ;;  %v102_v53 = vld [vmem:[#allocation5 + $0x1c8] sm:$0xff]  ;;  %v1107_v54 = vpack.c.bf16 %v84_v48, %v83_v47  ;;  %v53_v56 = vld [vmem:[#allocation5 + $0x40] sm:$0xff]  ;;  %v71_v63 = vld [vmem:[#allocation5 + $0xd0] sm:$0xff] }
  0x33   :  { %1074 = vmatprep.subr.bf16.mxu0 %v1073_v39  ;;  %v54_v57 = vld [vmem:[#allocation5 + $0x48] sm:$0xff]  ;;  %v85_v58 = vld [vmem:[#allocation5 + $0x140] sm:$0xff]  ;;  %v1109_v61 = vpack.c.bf16 %v102_v53, %v101_v52  ;;  %v72_v0 = vld [vmem:[#allocation5 + $0xd8] sm:$0xff] }
  0x34   :  { %1104 = vmatpush3.bf16.msra.mxu1 %v1103_v38  ;;  %v86_v62 = vld [vmem:[#allocation5 + $0x148] sm:$0xff]  ;;  %v103_v1 = vld [vmem:[#allocation5 + $0x1d0] sm:$0xff]  ;;  %v104_v2 = vld [vmem:[#allocation5 + $0x1d8] sm:$0xff]  ;;  %v1079_v3 = vpack.c.bf16 %v54_v57, %v53_v56  ;;  %v1081_v6 = vpack.c.bf16 %v72_v0, %v71_v63 }
  0x35   :  { %1106 = vmatprep.subr.bf16.mxu1 %v1105_v46  ;;  %v55_v4 = vld [vmem:[#allocation5 + $0x50] sm:$0xff]  ;;  %v1111_v5 = vpack.c.bf16 %v86_v62, %v85_v58  ;;  %v56_v7 = vld [vmem:[#allocation5 + $0x58] sm:$0xff]  ;;  %v1113_v11 = vpack.c.bf16 %v104_v2, %v103_v1  ;;  %v73_v12 = vld [vmem:[#allocation5 + $0xe0] sm:$0xff] }
  0x36   :  { %1076 = vmatpush3.bf16.msra.mxu0 %v1075_v51  ;;  %v87_v8 = vld [vmem:[#allocation5 + $0x150] sm:$0xff]  ;;  %v88_v9 = vld [vmem:[#allocation5 + $0x158] sm:$0xff]  ;;  %v74_v13 = vld [vmem:[#allocation5 + $0xe8] sm:$0xff]  ;;  %v1083_v16 = vpack.c.bf16 %v56_v7, %v55_v4 }
  0x37   :  { %1078 = vmatprep.subr.bf16.mxu0 %v1077_v55  ;;  %v105_v14 = vld [vmem:[#allocation5 + $0x1e0] sm:$0xff]  ;;  %v106_v15 = vld [vmem:[#allocation5 + $0x1e8] sm:$0xff]  ;;  %v1115_v17 = vpack.c.bf16 %v88_v9, %v87_v8  ;;  %v1085_v19 = vpack.c.bf16 %v74_v13, %v73_v12  ;;  %v75_v27 = vld [vmem:[#allocation5 + $0xf0] sm:$0xff] }
  0x38   :  { %1108 = vmatpush3.bf16.msra.mxu1 %v1107_v54  ;;  %v41_v18 = vld [vmem:[#allocation2] sm:$0xff]  ;;  %v1117_v25 = vpack.c.bf16 %v106_v15, %v105_v14  ;;  %v76_v28 = vld [vmem:[#allocation5 + $0xf8] sm:$0xff]  ;;  %v107_v29 = vld [vmem:[#allocation5 + $0x1f0] sm:$0xff] }
  0x39   :  { %1110 = vmatprep.subr.bf16.mxu1 %v1109_v61  ;;  %v57_v20 = vld [vmem:[#allocation5 + $0x60] sm:$0xff]  ;;  %v58_v21 = vld [vmem:[#allocation5 + $0x68] sm:$0xff]  ;;  %v259_v23 = vrot.slane %v41_v18, %v1403_v10  ;;  %v252_v24 = vcombine.high %v41_v18, %v41_v18  ;;  %v108_v30 = vld [vmem:[#allocation5 + $0x1f8] sm:$0xff]  ;;  %v1089_v35 = vpack.c.bf16 %v76_v28, %v75_v27 }
  0x3a   :  { %1080 = vmatpush3.bf16.msra.mxu0 %v1079_v3  ;;  %v89_v22 = vld [vmem:[#allocation5 + $0x160] sm:$0xff]  ;;  %v90_v26 = vld [vmem:[#allocation5 + $0x168] sm:$0xff]  ;;  %v1087_v33 = vpack.c.bf16 %v58_v21, %v57_v20  ;;  %v59_v36 = vld [vmem:[#allocation5 + $0x70] sm:$0xff]  ;;  %v1121_v40 = vpack.c.bf16 %v108_v30, %v107_v29 }
  0x3b   :  { %1082 = vmatprep.subr.bf16.mxu0 %v1081_v6  ;;  %v267_v31 = vcombine.high %v259_v23, %v259_v23  ;;  %v266_v32 = vrot.slane %v252_v24, %v1403_v10  ;;  %v1119_v34 = vpack.c.bf16 %v90_v26, %v89_v22  ;;  %v60_v37 = vld [vmem:[#allocation5 + $0x78] sm:$0xff]  ;;  %v91_v38 = vld [vmem:[#allocation5 + $0x170] sm:$0xff]  ;;  %v125_v42 = vld [vmem:[#allocation5 + $0x280] sm:$0xff] }
  0x3c   :  { %1112 = vmatpush3.bf16.msra.mxu1 %v1111_v5  ;;  %v92_v41 = vld [vmem:[#allocation5 + $0x178] sm:$0xff]  ;;  %v126_v43 = vld [vmem:[#allocation5 + $0x288] sm:$0xff]  ;;  %v157_v44 = vld [vmem:[#allocation5 + $0x380] sm:$0xff]  ;;  %v1091_v46 = vpack.c.bf16 %v60_v37, %v59_v36 }
  0x3d   :  { %1114 = vmatprep.subr.bf16.mxu1 %v1113_v11  ;;  %v268_v39 = vcombine.high %v266_v32, %v266_v32  ;;  %389 = vmatprep.mubr.f32.mxu0 %v267_v31  ;;  %v158_v45 = vld [vmem:[#allocation5 + $0x388] sm:$0xff]  ;;  %v1123_v47 = vpack.c.bf16 %v92_v41, %v91_v38  ;;  %v1125_v48 = vpack.c.bf16 %v126_v43, %v125_v42  ;;  %v109_v49 = vld [vmem:[#allocation5 + $0x200] sm:$0xff]  ;;  %v127_v54 = vld [vmem:[#allocation5 + $0x290] sm:$0xff] }
  0x3e   :  { %1084 = vmatpush3.bf16.msra.mxu0 %v1083_v16  ;;  %v110_v50 = vld [vmem:[#allocation5 + $0x208] sm:$0xff]  ;;  %v141_v51 = vld [vmem:[#allocation5 + $0x300] sm:$0xff]  ;;  %v1157_v52 = vpack.c.bf16 %v158_v45, %v157_v44  ;;  %v128_v55 = vld [vmem:[#allocation5 + $0x298] sm:$0xff] }
  0x3f   :  { %1086 = vmatprep.subr.bf16.mxu0 %v1085_v19  ;;  %459 = vmatprep.mubr.f32.mxu1 %v268_v39  ;;  %v142_v53 = vld [vmem:[#allocation5 + $0x308] sm:$0xff]  ;;  %v159_v56 = vld [vmem:[#allocation5 + $0x390] sm:$0xff]  ;;  %v160_v57 = vld [vmem:[#allocation5 + $0x398] sm:$0xff]  ;;  %v1127_v58 = vpack.c.bf16 %v110_v50, %v109_v49  ;;  %v1129_v60 = vpack.c.bf16 %v128_v55, %v127_v54 }
  0x40   :  { %1116 = vmatpush3.bf16.msra.mxu1 %v1115_v17  ;;  %v1159_v59 = vpack.c.bf16 %v142_v53, %v141_v51  ;;  %v111_v61 = vld [vmem:[#allocation5 + $0x210] sm:$0xff]  ;;  %v112_v62 = vld [vmem:[#allocation5 + $0x218] sm:$0xff]  ;;  %v1161_v0 = vpack.c.bf16 %v160_v57, %v159_v56  ;;  %v129_v2 = vld [vmem:[#allocation5 + $0x2a0] sm:$0xff] }
  0x41   :  { %1118 = vmatprep.subr.bf16.mxu1 %v1117_v25  ;;  %v143_v63 = vld [vmem:[#allocation5 + $0x310] sm:$0xff]  ;;  %v144_v1 = vld [vmem:[#allocation5 + $0x318] sm:$0xff]  ;;  %v130_v3 = vld [vmem:[#allocation5 + $0x2a8] sm:$0xff]  ;;  %v1131_v6 = vpack.c.bf16 %v112_v62, %v111_v61 }
  0x42   :  { %1088 = vmatpush3.bf16.msra.mxu0 %v1087_v33  ;;  %v161_v4 = vld [vmem:[#allocation5 + $0x3a0] sm:$0xff]  ;;  %v162_v5 = vld [vmem:[#allocation5 + $0x3a8] sm:$0xff]  ;;  %v1163_v7 = vpack.c.bf16 %v144_v1, %v143_v63  ;;  %v1133_v8 = vpack.c.bf16 %v130_v3, %v129_v2  ;;  %v131_v15 = vld [vmem:[#allocation5 + $0x2b0] sm:$0xff] }
  0x43   :  { %1090 = vmatprep.subr.bf16.mxu0 %v1089_v35  ;;  %v113_v9 = vld [vmem:[#allocation5 + $0x220] sm:$0xff]  ;;  %v114_v11 = vld [vmem:[#allocation5 + $0x228] sm:$0xff]  ;;  %v1165_v13 = vpack.c.bf16 %v162_v5, %v161_v4  ;;  %v132_v16 = vld [vmem:[#allocation5 + $0x2b8] sm:$0xff] }
  0x44   :  { %1120 = vmatpush3.bf16.msra.mxu1 %v1119_v34  ;;  %v145_v12 = vld [vmem:[#allocation5 + $0x320] sm:$0xff]  ;;  %v146_v14 = vld [vmem:[#allocation5 + $0x328] sm:$0xff]  ;;  %v163_v17 = vld [vmem:[#allocation5 + $0x3b0] sm:$0xff]  ;;  %v1135_v19 = vpack.c.bf16 %v114_v11, %v113_v9  ;;  %v1137_v22 = vpack.c.bf16 %v132_v16, %v131_v15 }
  0x45   :  { %1122 = vmatprep.subr.bf16.mxu1 %v1121_v40  ;;  %v164_v18 = vld [vmem:[#allocation5 + $0x3b8] sm:$0xff]  ;;  %v115_v20 = vld [vmem:[#allocation5 + $0x230] sm:$0xff]  ;;  %v1167_v21 = vpack.c.bf16 %v146_v14, %v145_v12  ;;  %v133_v27 = vld [vmem:[#allocation5 + $0x2c0] sm:$0xff] }
  0x46   :  { %1092 = vmatpush3.bf16.msra.mxu0 %v1091_v46  ;;  %v147_v24 = vld [vmem:[#allocation5 + $0x330] sm:$0xff]  ;;  %v148_v25 = vld [vmem:[#allocation5 + $0x338] sm:$0xff]  ;;  %v1169_v26 = vpack.c.bf16 %v164_v18, %v163_v17  ;;  %v134_v28 = vld [vmem:[#allocation5 + $0x2c8] sm:$0xff] }
  0x47   :  { %1126 = vmatprep.subr.bf16.mxu0 %v1125_v48  ;;  %v42_v29 = vld [vmem:[#allocation2 + $0x8] sm:$0xff]  ;;  %v165_v30 = vld [vmem:[#allocation5 + $0x3c0] sm:$0xff]  ;;  %v1171_v35 = vpack.c.bf16 %v148_v25, %v147_v24  ;;  %v1141_v36 = vpack.c.bf16 %v134_v28, %v133_v27  ;;  %v136_v45 = vld [vmem:[#allocation5 + $0x2d8] sm:$0xff] }
  0x48   :  { %1124 = vmatpush3.bf16.msra.mxu1 %v1123_v47  ;;  %v166_v31 = vld [vmem:[#allocation5 + $0x3c8] sm:$0xff]  ;;  %v269_v33 = vcombine.high %v42_v29, %v42_v29  ;;  %v117_v37 = vld [vmem:[#allocation5 + $0x240] sm:$0xff]  ;;  %v135_v44 = vld [vmem:[#allocation5 + $0x2d0] sm:$0xff] }
  0x49   :  { %1158 = vmatprep.subr.bf16.mxu1 %v1157_v52  ;;  %390 = vmatmul.mubr.f32.vlgmr.msra.gmra.mrb[0].mxu0 %v259_v23  ;;  %v116_v23 = vld [vmem:[#allocation5 + $0x238] sm:$0xff]  ;;  %v118_v38 = vld [vmem:[#allocation5 + $0x248] sm:$0xff]  ;;  %v149_v39 = vld [vmem:[#allocation5 + $0x340] sm:$0xff]  ;;  %v1173_v42 = vpack.c.bf16 %v166_v31, %v165_v30  ;;  %v1145_v51 = vpack.c.bf16 %v136_v45, %v135_v44 }
  0x4a   :  { %1128 = vmatpush3.bf16.msra.mxu0 %v1127_v58  ;;  %v1139_v34 = vpack.c.bf16 %v116_v23, %v115_v20  ;;  %v1413_v41 = vrot.slane %v269_v33, %v1403_v10  ;;  %v150_v43 = vld [vmem:[#allocation5 + $0x348] sm:$0xff]  ;;  %v167_v46 = vld [vmem:[#allocation5 + $0x3d0] sm:$0xff]  ;;  %v168_v47 = vld [vmem:[#allocation5 + $0x3d8] sm:$0xff]  ;;  %v1143_v49 = vpack.c.bf16 %v118_v38, %v117_v37 }
  0x4b   :  { %460 = vmatmul.mubr.f32.vlgmr.msra.gmra.mrb[0].mxu1 %v266_v32  ;;  %1130 = vmatprep.subr.bf16.mxu0 %v1129_v60  ;;  %v1408_v32 = vrot.slane %v42_v29, %v1403_v10  ;;  %v1175_v50 = vpack.c.bf16 %v150_v43, %v149_v39  ;;  %v119_v52 = vld [vmem:[#allocation5 + $0x250] sm:$0xff]  ;;  %v120_v53 = vld [vmem:[#allocation5 + $0x258] sm:$0xff]  ;;  %v1177_v55 = vpack.c.bf16 %v168_v47, %v167_v46  ;;  %v137_v57 = vld [vmem:[#allocation5 + $0x2e0] sm:$0xff] }
  0x4c   :  { %1160 = vmatpush3.bf16.msra.mxu1 %v1159_v59  ;;  %v285_v48 = vcombine.high %v1413_v41, %v1413_v41  ;;  %v151_v54 = vld [vmem:[#allocation5 + $0x350] sm:$0xff]  ;;  %v152_v56 = vld [vmem:[#allocation5 + $0x358] sm:$0xff]  ;;  %v138_v58 = vld [vmem:[#allocation5 + $0x2e8] sm:$0xff]  ;;  %v1147_v61 = vpack.c.bf16 %v120_v53, %v119_v52 }
  0x4d   :  { %1162 = vmatprep.subr.bf16.mxu1 %v1161_v0  ;;  %v284_v40 = vcombine.high %v1408_v32, %v1408_v32  ;;  %v169_v59 = vld [vmem:[#allocation5 + $0x3e0] sm:$0xff]  ;;  %v170_v60 = vld [vmem:[#allocation5 + $0x3e8] sm:$0xff]  ;;  %v1179_v62 = vpack.c.bf16 %v152_v56, %v151_v54  ;;  %v1149_v63 = vpack.c.bf16 %v138_v58, %v137_v57  ;;  %v139_v5 = vld [vmem:[#allocation5 + $0x2f0] sm:$0xff] }
  0x4e   :  { %1132 = vmatpush3.bf16.msra.mxu0 %v1131_v6  ;;  %599 = vmatprep.mubr.f32.mxu1 %v285_v48  ;;  %v121_v0 = vld [vmem:[#allocation5 + $0x260] sm:$0xff]  ;;  %v122_v1 = vld [vmem:[#allocation5 + $0x268] sm:$0xff]  ;;  %v1181_v3 = vpack.c.bf16 %v170_v60, %v169_v59  ;;  %v140_v6 = vld [vmem:[#allocation5 + $0x2f8] sm:$0xff] }
  0x4f   :  { %1134 = vmatprep.subr.bf16.mxu0 %v1133_v8  ;;  %529 = vmatprep.mubr.f32.mxu0 %v284_v40  ;;  %v153_v2 = vld [vmem:[#allocation5 + $0x360] sm:$0xff]  ;;  %v154_v4 = vld [vmem:[#allocation5 + $0x368] sm:$0xff]  ;;  %v172_v8 = vld [vmem:[#allocation5 + $0x3f8] sm:$0xff]  ;;  %v1151_v9 = vpack.c.bf16 %v122_v1, %v121_v0  ;;  %v1153_v12 = vpack.c.bf16 %v140_v6, %v139_v5 }
  0x50   :  { %1164 = vmatpush3.bf16.msra.mxu1 %v1163_v7  ;;  %v171_v7 = vld [vmem:[#allocation5 + $0x3f0] sm:$0xff]  ;;  %v1183_v11 = vpack.c.bf16 %v154_v4, %v153_v2  ;;  %v124_v14 = vld [vmem:[#allocation5 + $0x278] sm:$0xff]  ;;  %v189_v18 = vld [vmem:[#allocation5 + $0x480] sm:$0xff] }
  0x51   :  { %1166 = vmatprep.subr.bf16.mxu1 %v1165_v13  ;;  %v123_v13 = vld [vmem:[#allocation5 + $0x270] sm:$0xff]  ;;  %v1185_v16 = vpack.c.bf16 %v172_v8, %v171_v7  ;;  %v156_v17 = vld [vmem:[#allocation5 + $0x378] sm:$0xff]  ;;  %v221_v20 = vld [vmem:[#allocation5 + $0x580] sm:$0xff] }
  0x52   :  { %1136 = vmatpush3.bf16.msra.mxu0 %v1135_v19  ;;  %v155_v15 = vld [vmem:[#allocation5 + $0x370] sm:$0xff]  ;;  %v190_v19 = vld [vmem:[#allocation5 + $0x488] sm:$0xff]  ;;  %v173_v23 = vld [vmem:[#allocation5 + $0x400] sm:$0xff] }
  0x53   :  { %1138 = vmatprep.subr.bf16.mxu0 %v1137_v22  ;;  %v1155_v22 = vpack.c.bf16 %v124_v14, %v123_v13  ;;  %v1187_v24 = vpack.c.bf16 %v156_v17, %v155_v15  ;;  %v1189_v25 = vpack.c.bf16 %v190_v19, %v189_v18  ;;  %v205_v27 = vld [vmem:[#allocation5 + $0x500] sm:$0xff]  ;;  %v206_v28 = vld [vmem:[#allocation5 + $0x508] sm:$0xff]  ;;  %v191_v30 = vld [vmem:[#allocation5 + $0x490] sm:$0xff] }
  0x54   :  { %1168 = vmatpush3.bf16.msra.mxu1 %v1167_v21  ;;  %v222_v21 = vld [vmem:[#allocation5 + $0x588] sm:$0xff]  ;;  %v192_v31 = vld [vmem:[#allocation5 + $0x498] sm:$0xff]  ;;  %v223_v33 = vld [vmem:[#allocation5 + $0x590] sm:$0xff] }
  0x55   :  { %1170 = vmatprep.subr.bf16.mxu1 %v1169_v26  ;;  %v174_v26 = vld [vmem:[#allocation5 + $0x408] sm:$0xff]  ;;  %v1221_v29 = vpack.c.bf16 %v222_v21, %v221_v20  ;;  %v43_v37 = vld [vmem:[#allocation2 + $0x10] sm:$0xff]  ;;  %v1193_v38 = vpack.c.bf16 %v192_v31, %v191_v30  ;;  %v193_v47 = vld [vmem:[#allocation5 + $0x4a0] sm:$0xff] }
  0x56   :  { %1140 = vmatpush3.bf16.msra.mxu0 %v1139_v34  ;;  %v224_v34 = vld [vmem:[#allocation5 + $0x598] sm:$0xff]  ;;  %v175_v39 = vld [vmem:[#allocation5 + $0x410] sm:$0xff]  ;;  %v1418_v43 = vrot.slane %v43_v37, %v1403_v10  ;;  %v286_v44 = vcombine.high %v43_v37, %v43_v37  ;;  %v194_v48 = vld [vmem:[#allocation5 + $0x4a8] sm:$0xff] }
  0x57   :  { %1142 = vmatprep.subr.bf16.mxu0 %v1141_v36  ;;  %v1223_v36 = vpack.c.bf16 %v206_v28, %v205_v27  ;;  %v176_v40 = vld [vmem:[#allocation5 + $0x418] sm:$0xff]  ;;  %v1225_v45 = vpack.c.bf16 %v224_v34, %v223_v33  ;;  %v177_v56 = vld [vmem:[#allocation5 + $0x420] sm:$0xff]  ;;  %v178_v57 = vld [vmem:[#allocation5 + $0x428] sm:$0xff] }
  0x58   :  { %1172 = vmatpush3.bf16.msra.mxu1 %v1171_v35  ;;  %v1191_v35 = vpack.c.bf16 %v174_v26, %v173_v23  ;;  %v208_v46 = vld [vmem:[#allocation5 + $0x518] sm:$0xff]  ;;  %v1424_v52 = vrot.slane %v286_v44, %v1403_v10  ;;  %v1195_v53 = vpack.c.bf16 %v176_v40, %v175_v39  ;;  %v209_v58 = vld [vmem:[#allocation5 + $0x520] sm:$0xff]  ;;  %v210_v60 = vld [vmem:[#allocation5 + $0x528] sm:$0xff] }
  0x59   :  { %1174 = vmatprep.subr.bf16.mxu1 %v1173_v42  ;;  %v207_v42 = vld [vmem:[#allocation5 + $0x510] sm:$0xff]  ;;  %v196_v10 = vld [vmem:[#allocation5 + $0x4b8] sm:$0xff]  ;;  %v1231_v0 = vpack.c.bf16 %v210_v60, %v209_v58  ;;  %v197_v7 = vld [vmem:[#allocation5 + $0x4c0] sm:$0xff] }
  0x5a   :  { %1144 = vmatpush3.bf16.msra.mxu0 %v1143_v49  ;;  %v225_v49 = vld [vmem:[#allocation5 + $0x5a0] sm:$0xff]  ;;  %v1227_v54 = vpack.c.bf16 %v208_v46, %v207_v42  ;;  %v179_v2 = vld [vmem:[#allocation5 + $0x430] sm:$0xff]  ;;  %v212_v6 = vld [vmem:[#allocation5 + $0x538] sm:$0xff] }
  0x5b   :  { %1146 = vmatprep.subr.bf16.mxu0 %v1145_v51  ;;  %v301_v51 = vcombine.high %v1418_v43, %v1418_v43  ;;  %v211_v4 = vld [vmem:[#allocation5 + $0x530] sm:$0xff]  ;;  %v198_v8 = vld [vmem:[#allocation5 + $0x4c8] sm:$0xff]  ;;  %v181_v15 = vld [vmem:[#allocation5 + $0x440] sm:$0xff] }
  0x5c   :  { %1176 = vmatpush3.bf16.msra.mxu1 %v1175_v50  ;;  %v226_v50 = vld [vmem:[#allocation5 + $0x5a8] sm:$0xff]  ;;  %v1235_v13 = vpack.c.bf16 %v212_v6, %v211_v4  ;;  %v1205_v14 = vpack.c.bf16 %v198_v8, %v197_v7  ;;  %v213_v17 = vld [vmem:[#allocation5 + $0x540] sm:$0xff]  ;;  %v199_v20 = vld [vmem:[#allocation5 + $0x4d0] sm:$0xff] }
  0x5d   :  { %1178 = vmatprep.subr.bf16.mxu1 %v1177_v55  ;;  %v1197_v55 = vpack.c.bf16 %v194_v48, %v193_v47  ;;  %v1229_v59 = vpack.c.bf16 %v226_v50, %v225_v49  ;;  %v214_v19 = vld [vmem:[#allocation5 + $0x548] sm:$0xff]  ;;  %v200_v21 = vld [vmem:[#allocation5 + $0x4d8] sm:$0xff]  ;;  %v183_v27 = vld [vmem:[#allocation5 + $0x450] sm:$0xff] }
  0x5e   :  { %1148 = vmatpush3.bf16.msra.mxu0 %v1147_v61  ;;  %v195_v61 = vld [vmem:[#allocation5 + $0x4b0] sm:$0xff]  ;;  %v232_v23 = vld [vmem:[#allocation5 + $0x5d8] sm:$0xff]  ;;  %v1209_v26 = vpack.c.bf16 %v200_v21, %v199_v20  ;;  %v201_v33 = vld [vmem:[#allocation5 + $0x4e0] sm:$0xff] }
  0x5f   :  { %1150 = vmatprep.subr.bf16.mxu0 %v1149_v63  ;;  %v228_v63 = vld [vmem:[#allocation5 + $0x5b8] sm:$0xff]  ;;  %v1201_v1 = vpack.c.bf16 %v196_v10, %v195_v61  ;;  %v202_v34 = vld [vmem:[#allocation5 + $0x4e8] sm:$0xff]  ;;  %v185_v40 = vld [vmem:[#allocation5 + $0x460] sm:$0xff] }
  0x60   :  { %1180 = vmatpush3.bf16.msra.mxu1 %v1179_v62  ;;  %v227_v62 = vld [vmem:[#allocation5 + $0x5b0] sm:$0xff]  ;;  %v184_v28 = vld [vmem:[#allocation5 + $0x458] sm:$0xff]  ;;  %v1213_v39 = vpack.c.bf16 %v202_v34, %v201_v33  ;;  %v186_v42 = vld [vmem:[#allocation5 + $0x468] sm:$0xff] }
  0x61   :  { %1182 = vmatprep.subr.bf16.mxu1 %v1181_v3  ;;  %v180_v3 = vld [vmem:[#allocation5 + $0x438] sm:$0xff]  ;;  %v1233_v5 = vpack.c.bf16 %v228_v63, %v227_v62  ;;  %v1211_v37 = vpack.c.bf16 %v184_v28, %v183_v27  ;;  %v217_v44 = vld [vmem:[#allocation5 + $0x560] sm:$0xff]  ;;  %v218_v46 = vld [vmem:[#allocation5 + $0x568] sm:$0xff]  ;;  %v1348_v63 = vmov 0.0|0.0  }
  0x62   :  { %1152 = vmatpush3.bf16.msra.mxu0 %v1151_v9  ;;  %v229_v9 = vld [vmem:[#allocation5 + $0x5c0] sm:$0xff]  ;;  %v216_v31 = vld [vmem:[#allocation5 + $0x558] sm:$0xff]  ;;  %v203_v47 = vld [vmem:[#allocation5 + $0x4f0] sm:$0xff] }
  0x63   :  { %1154 = vmatprep.subr.bf16.mxu0 %v1153_v12  ;;  %v1203_v12 = vpack.c.bf16 %v180_v3, %v179_v2  ;;  %v204_v48 = vld [vmem:[#allocation5 + $0x4f8] sm:$0xff]  ;;  %v235_v49 = vld [vmem:[#allocation5 + $0x5f0] sm:$0xff]  ;;  %v237_v61 = vld [vmem:[#allocation5 + $0x600] sm:$0xff]  ;;  %v1350_v2 = vmov 0.0  }
  0x64   :  { %1184 = vmatpush3.bf16.msra.mxu1 %v1183_v11  ;;  %v230_v11 = vld [vmem:[#allocation5 + $0x5c8] sm:$0xff]  ;;  %v236_v50 = vld [vmem:[#allocation5 + $0x5f8] sm:$0xff]  ;;  %v219_v58 = vld [vmem:[#allocation5 + $0x570] sm:$0xff] }
  0x65   :  { %1186 = vmatprep.subr.bf16.mxu1 %v1185_v16  ;;  %v182_v16 = vld [vmem:[#allocation5 + $0x448] sm:$0xff]  ;;  %v1237_v18 = vpack.c.bf16 %v230_v11, %v229_v9  ;;  %v833_v3 = vld.sshfl [vmem:[#allocation2 + $0x18] sm:$0x3 pattern:$0x76325410] }
  0x66   :  { %1156 = vmatpush3.bf16.msra.mxu0 %v1155_v22  ;;  %v231_v22 = vld [vmem:[#allocation5 + $0x5d0] sm:$0xff]  ;;  %v238_v10 = vld [vmem:[#allocation5 + $0x608] sm:$0xff] }
  0x67   :  { %1190 = vmatprep.subr.bf16.mxu0 %v1189_v25  ;;  %v1239_v25 = vpack.c.bf16 %v214_v19, %v213_v17  ;;  %v1241_v30 = vpack.c.bf16 %v232_v23, %v231_v22  ;;  %v1254_v62 = vpack.c.bf16 %v238_v10, %v237_v61 }
  0x68   :  { %1188 = vmatpush3.bf16.msra.mxu1 %v1187_v24  ;;  %v1207_v24 = vpack.c.bf16 %v182_v16, %v181_v15 }
  0x69   :  { %1222 = vmatprep.subr.bf16.mxu1 %v1221_v29  ;;  %530 = vmatmul.mubr.f32.vlgmr.msra.gmra.mrb[2].mxu0 %v1408_v32  ;;  %v302_v32 = vcombine.high %v1424_v52, %v1424_v52  ;;  %v215_v29 = vld [vmem:[#allocation5 + $0x550] sm:$0xff] }
  0x6a   :  { %1192 = vmatpush3.bf16.msra.mxu0 %v1191_v35  ;;  %669 = vmatprep.mubr.f32.mxu0 %v301_v51  ;;  %v233_v35 = vld [vmem:[#allocation5 + $0x5e0] sm:$0xff]  ;;  %v1215_v51 = vpack.c.bf16 %v186_v42, %v185_v40 }
  0x6b   :  { %600 = vmatmul.mubr.f32.vlgmr.msra.gmra.mrb[2].mxu1 %v1413_v41  ;;  %1194 = vmatprep.subr.bf16.mxu0 %v1193_v38  ;;  %v1199_v41 = vpack.c.bf16 %v178_v57, %v177_v56  ;;  %v1243_v38 = vpack.c.bf16 %v216_v31, %v215_v29  ;;  %v188_v56 = vld [vmem:[#allocation5 + $0x478] sm:$0xff]  ;;  %v1249_v57 = vpack.c.bf16 %v236_v50, %v235_v49 }
  0x6c   :  { %1224 = vmatpush3.bf16.msra.mxu1 %v1223_v36  ;;  %739 = vmatprep.mubr.f32.mxu1 %v302_v32  ;;  %v234_v36 = vld [vmem:[#allocation5 + $0x5e8] sm:$0xff]  ;;  %v220_v32 = vld [vmem:[#allocation5 + $0x578] sm:$0xff] }
  0x6d   :  { %1226 = vmatprep.subr.bf16.mxu1 %v1225_v45  ;;  %v1245_v45 = vpack.c.bf16 %v234_v36, %v233_v35  ;;  %v1251_v60 = vpack.c.bf16 %v220_v32, %v219_v58 }
  0x6e   :  { %1196 = vmatpush3.bf16.msra.mxu0 %v1195_v53  ;;  %v1247_v53 = vpack.c.bf16 %v218_v46, %v217_v44 }
  0x6f   :  { %1198 = vmatprep.subr.bf16.mxu0 %v1197_v55  ;;  %v187_v55 = vld [vmem:[#allocation5 + $0x470] sm:$0xff] }
  0x70   :  { %1228 = vmatpush3.bf16.msra.mxu1 %v1227_v54  ;;  %v1217_v54 = vpack.c.bf16 %v204_v48, %v203_v47 }
  0x71   :  { %1230 = vmatprep.subr.bf16.mxu1 %v1229_v59  ;;  %v1219_v59 = vpack.c.bf16 %v188_v56, %v187_v55 }
  0x72   :  { %1200 = vmatpush3.bf16.msra.mxu0 %v1199_v41  ;;  %v239_v41 = vld [vmem:[#allocation5 + $0x610] sm:$0xff] }
  0x73   :  { %1202 = vmatprep.subr.bf16.mxu0 %v1201_v1 }
  0x74   :  { %1232 = vmatpush3.bf16.msra.mxu1 %v1231_v0  ;;  %v240_v0 = vld [vmem:[#allocation5 + $0x618] sm:$0xff] }
  0x75   :  { %1234 = vmatprep.subr.bf16.mxu1 %v1233_v5  ;;  %v1257_v1 = vpack.c.bf16 %v240_v0, %v239_v41  ;;  %v832_v5 = vld [vmem:[%s1448_s2] ss:$0 sm:$0xff]  ;;  %s1351_s2 = smov [#allocation7]  }
  0x76   :  { %1204 = vmatpush3.bf16.msra.mxu0 %v1203_v12  ;;  %s822_s11 = sshll.u32 %s1351_s2, 4  ;;  %s823_s11 = int_to_ptr.vmem [resolvable:$true] %s822_s11 }
  0x77   :  { %1206 = vmatprep.subr.bf16.mxu0 %v1205_v14  ;;  %s1315_s12 = scalar_lea.vmem %s823_s11, 32  ;;  %p1320_p3 = scmp.lt.s32.totalorder %s823_s11, %s823_s11 }
  0x78   :  { %1236 = vmatpush3.bf16.msra.mxu1 %v1235_v13  ;;  %p1316_p2 = scmp.ne.s32.totalorder %s823_s11, %s1315_s12  ;;  %p1321_p4 = scmp.lt.s32.totalorder %s1315_s12, %s1315_s12 }
  0x79   :  { %1238 = vmatprep.subr.bf16.mxu1 %v1237_v18 }
  0x7a   :  { %1208 = vmatpush3.bf16.msra.mxu0 %v1207_v24  ;;  %p1322_p5 = por %p1321_p4, %p1320_p3 }
  0x7b   :  { %1210 = vmatprep.subr.bf16.mxu0 %v1209_v26 }
  0x7c   :  { %1240 = vmatpush3.bf16.msra.mxu1 %v1239_v25  ;;  %p1323_p6 = pnand %p1322_p5, %p1316_p2 }
  0x7d   :  { %1242 = vmatprep.subr.bf16.mxu1 %v1241_v30 }
  0x7e   :  { %1212 = vmatpush3.bf16.msra.mxu0 %v1211_v37 }
  0x7f   :  { %1214 = vmatprep.subr.bf16.mxu0 %v1213_v39 }
  0x80   :  { %1244 = vmatpush3.bf16.msra.mxu1 %v1243_v38 }
  0x81   :  { %1246 = vmatprep.subr.bf16.mxu1 %v1245_v45 }
  0x82   :  { %1216 = vmatpush3.bf16.msra.mxu0 %v1215_v51 }
  0x83   :  { %1218 = vmatprep.subr.bf16.mxu0 %v1217_v54 }
  0x84   :  { %1248 = vmatpush3.bf16.msra.mxu1 %v1247_v53 }
  0x85   :  { %1250 = vmatprep.subr.bf16.mxu1 %v1249_v57 }
  0x86   :  { %1220 = vmatpush3.bf16.msra.mxu0 %v1219_v59 }
  0x87   :  { %1253 = vmatprep.subr.bf16.mxu0 %v1348_v63 }
  0x88   :  { %1252 = vmatpush3.bf16.msra.mxu1 %v1251_v60 }
  0x89   :  { %670 = vmatmul.mubr.f32.vlgmr.msra.gmra.mrb[4].mxu0 %v1418_v43 }
  0x8a   :  { %1255 = vmatpush3.bf16.msra.mxu0 %v1254_v62  ;;  %1058 = vmatprep.mubr.msk.f32.mxu0 %vm1349_vm0, %v1350_v2 }
  0x8b   :  { %740 = vmatmul.mubr.f32.vlgmr.msra.gmra.mrb[4].mxu1 %v1424_v52  ;;  %1256 = vmatprep.subr.bf16.mxu0 %v1348_v63 }
  0x8e   :  { %1258 = vmatpush3.bf16.msra.mxu0 %v1257_v1 }
  0x91   :  { %1059 = vmatmul.mubr.msk.f32.vlgmr.msra.gmra.mrb[6].mxu0 %vm322_vm1, %v833_v3 }
 0x11c   :  { %v867_v4 = vpop.f32.mrb[0].mxu0 }
 0x11d   :  { %v868_v6 = vpop.f32.mrb[1].mxu0 }
 0x11e   :  { %v902_v7 = vpop.f32.mrb[0].mxu1  ;;  %v869_v43 = vadd.f32 %v868_v6, %v867_v4 }
 0x11f   :  { %v903_v8 = vpop.f32.mrb[1].mxu1 }
 0x120   :  { %v904_v9 = vadd.f32 %v903_v8, %v902_v7  ;;  %v392_v52 = vadd.f32 %v869_v43, %v832_v5 }
 0x122   :  { %v462_v11 = vadd.f32 %v904_v9, %v392_v52 }
 0x13c   :  { %v937_v12 = vpop.f32.mrb[2].mxu0 }
 0x13d   :  { %v938_v13 = vpop.f32.mrb[3].mxu0 }
 0x13e   :  { %v972_v14 = vpop.f32.mrb[2].mxu1  ;;  %v939_v15 = vadd.f32 %v938_v13, %v937_v12 }
 0x13f   :  { %v973_v16 = vpop.f32.mrb[3].mxu1 }
 0x140   :  { %v974_v17 = vadd.f32 %v973_v16, %v972_v14  ;;  %v532_v18 = vadd.f32 %v939_v15, %v462_v11 }
 0x142   :  { %v602_v19 = vadd.f32 %v974_v17, %v532_v18 }
 0x15c   :  { %v1007_v20 = vpop.f32.mrb[4].mxu0 }
 0x15d   :  { %v1008_v21 = vpop.f32.mrb[5].mxu0 }
 0x15e   :  { %v1042_v22 = vpop.f32.mrb[4].mxu1  ;;  %v1009_v23 = vadd.f32 %v1008_v21, %v1007_v20 }
 0x15f   :  { %v1043_v24 = vpop.f32.mrb[5].mxu1 }
 0x160   :  { %v1044_v25 = vadd.f32 %v1043_v24, %v1042_v22  ;;  %v672_v26 = vadd.f32 %v1009_v23, %v602_v19 }
 0x162   :  { %v742_v27 = vadd.f32 %v1044_v25, %v672_v26 }
 0x164   :  { %v811_v28 = vpop.f32.mrb[6].mxu0 }
 0x165   :  { %v812_v29 = vadd.f32 %v811_v28, %v742_v27  ;;  %v1060_v30 = vpop.f32.mrb[7].mxu0 }
 0x167   :  { %815 = vst [vmem:[#allocation7] sm:$0x3] %v812_v29 }
 0x168   :  { %1326 = shalt.err (!%p1323_p6)
}
 0x169   :  { %s1327_s15 = scalar_lea.hbm %s1449_s3, 32 }
 0x16a   :  { %p1328_p7 = scmp.ne.s32.totalorder %s1449_s3, %s1327_s15  ;;  %p1331_p8 = scmp.lt.u32.totalorder %s1327_s15, %s1449_s3 }
 0x16c   :  { %p1333_p9 = pnand %p1331_p8, %p1328_p7 }
 0x16e   :  { %1336 = shalt.err (!%p1333_p9)
}
 0x16f   :  { %825 = dma.vmem_to_hbm [thread:$0]  %s823_s11, 32, %s1449_s3, [#allocation4]  }
 0x170   :  { %1341 = dma.done.wait [#allocation4], 32  }
 0x171   :  { %1342 = vsyncadd [#allocation4], 4294967264 }
 0x172   :  { %829 = vsyncpa [#allocation3], 1 }
 0x173   :  { %830 = vsyncpa [#allocation6], 1 }
 0x174   :  { %831 = vsyncpa [#allocation4], 1 }

</bundles_post_ra>
